<compile_context>
chip_gen: v6e
topology: v6e:2x2x1
jax: 0.10.0
libtpu: 0.0.40
codegen_flags: <defaults>
</compile_context>

<pallas_src>
import functools

import jax
import jax.numpy as jnp
from jax.experimental import pallas as pl
from jax.experimental.pallas import tpu as pltpu

IN_CHANNELS = 4
HID = 64
NUM_CLASSES = 3
NUM_UNIT = 2

HID_P = 128                 # hidden width padded to a full 128-lane vreg
W3 = 3 * HID_P              # fused [lin1 | lin2 | lin3] weight-block width


def _round_up(v, m):
    return ((v + m - 1) // m) * m


def _pick_tile(n_pad):
    # Largest lane-aligned tile that divides the padded node count; 512-1024
    # edge tiles already reach ~85% of the HBM roofline per the reference data.
    for t in (512, 256, 128):
        if n_pad % t == 0:
            return t
    return 128


def _vmem_limit_bytes():
    # Raise the default scoped-VMEM limit (16/32 MiB) toward the physical
    # capacity of whatever generation we are running on.
    try:
        return int(pltpu.get_tpu_info().vmem_capacity_bytes * 0.8)
    except Exception:
        return 48 * 1024 * 1024   # safe on v5e / v6e / v7x


def spmotif_kernel(tm, tk,
                   x_ref, adj_ref, pool_ref, wl_ref, bl_ref, wm_ref, bm_ref,
                   node_ref, graph_ref, pred_ref,
                   h_sc, a_sc, deg_sc, agg_sc, g_sc):
    f32, bf16 = jnp.float32, jnp.bfloat16
    l, d, s = pl.program_id(0), pl.program_id(1), pl.program_id(2)
    nl, nd, ns = pl.num_programs(0), pl.num_programs(1), pl.num_programs(2)
    doff = pl.multiple_of(d * tm, tm)
    soff = pl.multiple_of(s * tk, tk)

    # ---- one-time init (very first grid step) -------------------------------
    @pl.when((l == 0) & (d == 0) & (s == 0))
    def _seed():
        # node_emb is folded into layer 0's weights, so the "activation" that
        # feeds layer 0 is just the zero-padded bf16 raw features.
        h_sc[...] = x_ref[...]
        deg_sc[...] = jnp.zeros_like(deg_sc)
        g_sc[...] = jnp.zeros_like(g_sc)

    # ---- per-layer init: a = lin1(h) + b1 for ALL nodes, kept resident ------
    @pl.when((d == 0) & (s == 0))
    def _layer_init():
        a = jnp.dot(h_sc[...], wl_ref[:, 0:HID_P], preferred_element_type=f32)
        a_sc[...] = (a + bl_ref[:, 0:HID_P]).astype(bf16)

    # ---- per-dst-tile init: zero the aggregation accumulator ----------------
    @pl.when(s == 0)
    def _tile_init():
        agg_sc[...] = jnp.zeros_like(agg_sc)

    # ---- streamed aggregation over src tiles (MXU, bf16 in / f32 acc) -------
    #   agg_i += sum_{j in src tile} adj[i, j] * lin1(x)_j
    adj_blk = adj_ref[...]                                        # [tm, tk] bf16
    agg_sc[...] += jnp.dot(adj_blk, a_sc[pl.ds(soff, tk), :],
                           preferred_element_type=f32)

    # ---- weighted in-degree, fused into the layer-0 reduction (rides the
    #      VPU/XLU slots that are idle under the MXU-bound aggregation) -------
    @pl.when(l == 0)
    def _degree():
        deg_sc[pl.ds(doff, tm), :] += jnp.sum(adj_blk.astype(f32), axis=1,
                                              keepdims=True)

    # ---- end of the src reduction: LEConv combine + ReLU --------------------
    @pl.when(s == ns - 1)
    def _combine():
        h_old = h_sc[pl.ds(doff, tm), :]                          # [tm, 128] bf16
        bc = (jnp.dot(h_old, wl_ref[:, HID_P:W3], preferred_element_type=f32)
              + bl_ref[:, HID_P:W3])                              # [tm, 256] f32
        b = bc[:, 0:HID_P]                                        # lin2(x)_i
        c = bc[:, HID_P:2 * HID_P]                                # lin3(x)_i + b3
        deg = deg_sc[pl.ds(doff, tm), :]                          # [tm, 1] f32
        h_new = jnp.maximum(agg_sc[...] - deg * b + c, 0.0)       # ReLU, f32 tail
        h_sc[pl.ds(doff, tm), :] = h_new.astype(bf16)             # bf16 carry
        node_ref[...] = h_new.astype(node_ref.dtype)              # last layer wins

    # ---- last layer: accumulate the graph mean-pool for this dst tile -------
    @pl.when((s == ns - 1) & (l == nl - 1))
    def _pool():
        g_sc[...] += jnp.dot(pool_ref[...], h_sc[pl.ds(doff, tm), :],
                             preferred_element_type=f32)          # [G_pad, 128]

    # ---- very last grid step: graph representation + robust-MLP head --------
    @pl.when((s == ns - 1) & (l == nl - 1) & (d == nd - 1))
    def _head():
        g = g_sc[...]
        graph_ref[...] = g
        z = jnp.maximum(jnp.dot(g.astype(bf16), wm_ref[0:HID_P, :],
                                preferred_element_type=f32) + bm_ref[0:1, :], 0.0)
        pred_ref[...] = (jnp.dot(z.astype(bf16), wm_ref[HID_P:2 * HID_P, :],
                                 preferred_element_type=f32) + bm_ref[1:2, :])


def pack_params(params):
    """Pack the 16 parameter arrays into lane-dense bf16/f32 slabs.

    node_emb is folded into LEConv layer 0 (there is no nonlinearity between
    them in the reference):  x @ Wemb @ Wk + (bemb @ Wk + bk).
    """
    (wemb, bemb, w1a, b1a, w2a, w3a, b3a,
     w1b, b1b, w2b, w3b, b3b, wr1, br1, wr2, br2) = params

    # fold node_emb into layer 0's three linears (f32, done once in the wrapper)
    w1a_f, b1a_f = wemb @ w1a, bemb @ w1a + b1a
    w2a_f, b2a_f = wemb @ w2a, bemb @ w2a            # lin2 bias-free, emb bias folds in
    w3a_f, b3a_f = wemb @ w3a, bemb @ w3a + b3a

    wl = jnp.zeros((NUM_UNIT, HID_P, W3), jnp.float32)
    wl = wl.at[0, :IN_CHANNELS, 0:HID].set(w1a_f)
    wl = wl.at[0, :IN_CHANNELS, HID_P:HID_P + HID].set(w2a_f)
    wl = wl.at[0, :IN_CHANNELS, 2 * HID_P:2 * HID_P + HID].set(w3a_f)
    wl = wl.at[1, :HID, 0:HID].set(w1b)
    wl = wl.at[1, :HID, HID_P:HID_P + HID].set(w2b)
    wl = wl.at[1, :HID, 2 * HID_P:2 * HID_P + HID].set(w3b)

    bl = jnp.zeros((NUM_UNIT, 1, W3), jnp.float32)
    bl = bl.at[0, 0, 0:HID].set(b1a_f[0])
    bl = bl.at[0, 0, HID_P:HID_P + HID].set(b2a_f[0])
    bl = bl.at[0, 0, 2 * HID_P:2 * HID_P + HID].set(b3a_f[0])
    bl = bl.at[1, 0, 0:HID].set(b1b[0])
    bl = bl.at[1, 0, 2 * HID_P:2 * HID_P + HID].set(b3b[0])

    wm = jnp.zeros((2 * HID_P, HID_P), jnp.float32)
    wm = wm.at[0:HID, 0:2 * HID].set(wr1)                          # [64, 128]
    wm = wm.at[HID_P:HID_P + 2 * HID, 0:NUM_CLASSES].set(wr2)      # [128, 3]

    bm = jnp.zeros((8, HID_P), jnp.float32)
    bm = bm.at[0, 0:2 * HID].set(br1[0])
    bm = bm.at[1, 0:NUM_CLASSES].set(br2[0])

    return wl.astype(jnp.bfloat16), bl, wm.astype(jnp.bfloat16), bm


def build_dense_graph(src, dst, edge_w, batch, num_nodes, num_graphs):
    """Glue: densify the edge list / batch vector directly at padded bf16."""
    n_pad = _round_up(num_nodes, 128)
    g_pad = _round_up(num_graphs, 8)
    adj = (jnp.zeros((n_pad, n_pad), jnp.bfloat16)
           .at[dst, src].add(edge_w.astype(jnp.bfloat16)))
    cnt = jnp.zeros((num_graphs,), jnp.float32).at[batch].add(1.0)
    pool = ((batch[None, :] == jnp.arange(num_graphs)[:, None]).astype(jnp.float32)
            / jnp.maximum(cnt, 1.0)[:, None])                     # [G, N] mean pool
    pool_p = (jnp.zeros((g_pad, n_pad), jnp.float32)
              .at[:num_graphs, :num_nodes].set(pool))
    return adj, pool_p.astype(jnp.bfloat16)


@functools.partial(jax.jit, static_argnames=("num_graphs",))
def spmotif_forward(x, adj_p, pool_p, params, *, num_graphs):
    n = x.shape[0]
    n_pad = adj_p.shape[0]
    g_pad = pool_p.shape[0]
    tm = tk = _pick_tile(n_pad)
    grid = (NUM_UNIT, n_pad // tm, n_pad // tk)

    wl, bl, wm, bm = pack_params(params)
    x_p = (jnp.zeros((n_pad, HID_P), jnp.float32)
           .at[:n, :IN_CHANNELS].set(x).astype(jnp.bfloat16))

    flops = (2 * NUM_UNIT * n_pad * n_pad * HID_P            # adj @ lin1(x)
             + 2 * NUM_UNIT * n_pad * HID_P * W3             # per-node transforms
             + 2 * g_pad * n_pad * HID_P                     # mean pool
             + 4 * g_pad * HID_P * HID_P)                    # robust MLP
    bytes_accessed = (NUM_UNIT * n_pad * n_pad * 2           # adj streamed once/layer
                      + n_pad * HID_P * 4                    # x in + node reps out (bf16)
                      + g_pad * n_pad * 2                    # pool matrix
                      + 2 * g_pad * HID_P * 4                # graph reps + pred
                      + NUM_UNIT * HID_P * W3 * 2)           # weights
    cost = pl.CostEstimate(flops=int(flops), transcendentals=0,
                           bytes_accessed=int(bytes_accessed))

    kernel = functools.partial(spmotif_kernel, tm, tk)

    node_p, graph_p, pred_p = pl.pallas_call(
        kernel,
        out_shape=(jax.ShapeDtypeStruct((n_pad, HID_P), jnp.bfloat16),   # node reps
                   jax.ShapeDtypeStruct((g_pad, HID_P), jnp.float32),    # graph reps
                   jax.ShapeDtypeStruct((g_pad, HID_P), jnp.float32)),   # robust pred
        grid_spec=pltpu.PrefetchScalarGridSpec(
            num_scalar_prefetch=0,
            grid=grid,
            in_specs=[
                pl.BlockSpec((n_pad, HID_P), lambda l, d, s: (0, 0)),        # x (emb folded)
                pl.BlockSpec((tm, tk), lambda l, d, s: (d, s)),              # adj, streamed
                pl.BlockSpec((g_pad, tm), lambda l, d, s: (0, d)),           # pool columns
                pl.BlockSpec((None, HID_P, W3), lambda l, d, s: (l, 0, 0)),  # layer weights
                pl.BlockSpec((None, 1, W3), lambda l, d, s: (l, 0, 0)),      # layer biases
                pl.BlockSpec((2 * HID_P, HID_P), lambda l, d, s: (0, 0)),    # mlp weights
                pl.BlockSpec((8, HID_P), lambda l, d, s: (0, 0)),            # mlp biases
            ],
            out_specs=(
                pl.BlockSpec((tm, HID_P), lambda l, d, s: (d, 0)),
                pl.BlockSpec((g_pad, HID_P), lambda l, d, s: (0, 0)),
                pl.BlockSpec((g_pad, HID_P), lambda l, d, s: (0, 0)),
            ),
            scratch_shapes=[
                pltpu.VMEM((n_pad, HID_P), jnp.bfloat16),   # h: bf16 inter-layer carry
                pltpu.VMEM((n_pad, HID_P), jnp.bfloat16),   # a = lin1(h), resident per layer
                pltpu.VMEM((n_pad, 1), jnp.float32),        # weighted in-degree
                pltpu.VMEM((tm, HID_P), jnp.float32),       # aggregation accumulator
                pltpu.VMEM((g_pad, HID_P), jnp.float32),    # pooled graph accumulator
            ]),
        compiler_params=pltpu.CompilerParams(
            # src is a reduction axis; dst/layer carry dependencies through the
            # resident VMEM activations, so they must stay "arbitrary" here.
            dimension_semantics=("arbitrary", "arbitrary", "arbitrary"),
            vmem_limit_bytes=_vmem_limit_bytes()),
        cost_estimate=cost,
    )(x_p, adj_p, pool_p, wl, bl, wm, bm)

    # Slice the lane-dense padded outputs back to the module's shapes.
    node_x = node_p[:n, :HID].astype(jnp.float32)
    graph_x = graph_p[:num_graphs, :HID]
    pred = pred_p[:num_graphs, :NUM_CLASSES]
    return node_x, graph_x, pred


def _linear_params(key, fan_in, fan_out, bias=True):
    kw, kb = jax.random.split(key)
    bound = 1.0 / float(fan_in) ** 0.5
    w = jax.random.uniform(kw, (fan_in, fan_out), jnp.float32, -bound, bound)
    b = (jax.random.uniform(kb, (1, fan_out), jnp.float32, -bound, bound)
         if bias else None)
    return w, b


def init_params(key):
    ks = jax.random.split(key, 16)
    wemb, bemb = _linear_params(ks[0], IN_CHANNELS, HID)
    # LEConv layer A
    w1a, b1a = _linear_params(ks[1], HID, HID)
    w2a, _ = _linear_params(ks[2], HID, HID, bias=False)
    w3a, b3a = _linear_params(ks[3], HID, HID)
    # LEConv layer B
    w1b, b1b = _linear_params(ks[4], HID, HID)
    w2b, _ = _linear_params(ks[5], HID, HID, bias=False)
    w3b, b3b = _linear_params(ks[6], HID, HID)
    # robust_mlp
    wr1, br1 = _linear_params(ks[7], HID, 2 * HID)
    wr2, br2 = _linear_params(ks[8], 2 * HID, NUM_CLASSES)
    return [wemb, bemb,
            w1a, b1a, w2a, w3a, b3a,
            w1b, b1b, w2b, w3b, b3b,
            wr1, br1, wr2, br2]


def ref_forward(x, src, dst, ew, batch, G, params):
    """Pure-JAX f32 edge-list reference (matches the PyTorch module)."""
    (wemb, bemb, w1a, b1a, w2a, w3a, b3a,
     w1b, b1b, w2b, w3b, b3b, wr1, br1, wr2, br2) = params
    h = x @ wemb + bemb
    for (w1, b1, w2, w3, b3) in ((w1a, b1a, w2a, w3a, b3a),
                                 (w1b, b1b, w2b, w3b, b3b)):
        a = h @ w1 + b1
        b = h @ w2
        c = h @ w3 + b3
        msg = (a[src] - b[dst]) * ew[:, None]
        agg = jnp.zeros_like(h).at[dst].add(msg)
        h = jnp.maximum(agg + c, 0.0)
    node_x = h
    cnt = jnp.zeros((G,), jnp.float32).at[batch].add(1.0)
    sums = jnp.zeros((G, h.shape[1]), jnp.float32).at[batch].add(h)
    g = sums / jnp.maximum(cnt, 1.0)[:, None]
    z = jnp.maximum(g @ wr1 + br1, 0.0)
    pred = z @ wr2 + br2
    return node_x, g, pred


if __name__ == "__main__":
    key = jax.random.PRNGKey(0)
    k_param, k_x, k_src, k_dst, k_w = jax.random.split(key, 5)

    # Small but non-trivial: N=384 -> 3x3 (dst, src) adjacency tiles per layer,
    # exercising the streamed reduction, in-kernel degree and pooled outputs.
    N, E, G = 384, 1536, 8
    x = jax.random.normal(k_x, (N, IN_CHANNELS), jnp.float32)
    src = jax.random.randint(k_src, (E,), 0, N)          # edge_index[0]
    dst = jax.random.randint(k_dst, (E,), 0, N)          # edge_index[1]
    edge_w = jax.random.uniform(k_w, (E,), jnp.float32)  # edge_attr (scalar weights)
    batch = jnp.repeat(jnp.arange(G, dtype=jnp.int32), N // G)

    # Glue: densify graph structure (message aggregation + global_mean_pool).
    adj_p, pool_p = build_dense_graph(src, dst, edge_w, batch, N, G)
    params = init_params(k_param)

    node_x, graph_x, pred = spmotif_forward(x, adj_p, pool_p, params, num_graphs=G)
    jax.block_until_ready((node_x, graph_x, pred))

    # Sanity check against a pure-JAX f32 edge-list reference (kernel uses bf16
    # operands / activations with f32 accumulation, hence the loose tolerance).
    node_r, graph_r, pred_r = ref_forward(x, src, dst, edge_w, batch, G, params)
    assert jnp.allclose(node_x, node_r, rtol=5e-2, atol=5e-2), "node_x mismatch"
    assert jnp.allclose(graph_x, graph_r, rtol=5e-2, atol=5e-2), "graph_x mismatch"
    assert jnp.allclose(pred, pred_r, rtol=5e-2, atol=5e-2), "pred mismatch"

    print("KERNEL_OK")
</pallas_src>

<mosaic_0001>
module attributes {stable_mosaic.version = 11 : i64} {
  func.func @spmotif_kernel(%arg0: i32, %arg1: i32, %arg2: i32, %arg3: memref<384x128xbf16, #tpu.memory_space<vmem>>, %arg4: memref<128x128xbf16, #tpu.memory_space<vmem>>, %arg5: memref<8x128xbf16, #tpu.memory_space<vmem>>, %arg6: memref<1x128x384xbf16, #tpu.memory_space<vmem>>, %arg7: memref<1x1x384xf32, #tpu.memory_space<vmem>>, %arg8: memref<256x128xbf16, #tpu.memory_space<vmem>>, %arg9: memref<8x128xf32, #tpu.memory_space<vmem>>, %arg10: memref<128x128xbf16, #tpu.memory_space<vmem>>, %arg11: memref<8x128xf32, #tpu.memory_space<vmem>>, %arg12: memref<8x128xf32, #tpu.memory_space<vmem>>, %arg13: memref<384x128xbf16, #tpu.memory_space<vmem>>, %arg14: memref<384x128xbf16, #tpu.memory_space<vmem>>, %arg15: memref<384x1xf32, #tpu.memory_space<vmem>>, %arg16: memref<128x128xf32, #tpu.memory_space<vmem>>, %arg17: memref<8x128xf32, #tpu.memory_space<vmem>>) attributes {dimension_semantics = [#tpu.dimension_semantics<arbitrary>, #tpu.dimension_semantics<arbitrary>, #tpu.dimension_semantics<arbitrary>], iteration_bounds = array<i64: 2, 3, 3>, scalar_prefetch = 0 : i64, scratch_operands = 5 : i64, tpu.core_type = #tpu.core_type<tc>, window_params = [{pipeline_mode = #tpu.pipeline_mode<synchronous>, transform_indices = @transform_0, window_bounds = array<i64: 384, 128>}, {transform_indices = @transform_1, window_bounds = array<i64: 128, 128>}, {transform_indices = @transform_2, window_bounds = array<i64: 8, 128>}, {transform_indices = @transform_3, window_bounds = array<i64: 1, 128, 384>}, {transform_indices = @transform_4, window_bounds = array<i64: 1, 1, 384>}, {pipeline_mode = #tpu.pipeline_mode<synchronous>, transform_indices = @transform_5, window_bounds = array<i64: 256, 128>}, {pipeline_mode = #tpu.pipeline_mode<synchronous>, transform_indices = @transform_6, window_bounds = array<i64: 8, 128>}, {transform_indices = @transform_7, window_bounds = array<i64: 128, 128>}, {pipeline_mode = #tpu.pipeline_mode<synchronous>, transform_indices = @transform_8, window_bounds = array<i64: 8, 128>}, {pipeline_mode = #tpu.pipeline_mode<synchronous>, transform_indices = @transform_9, window_bounds = array<i64: 8, 128>}]} {
    %c128_i32 = arith.constant 128 : i32
    %0 = arith.muli %arg1, %c128_i32 : i32
    %1 = tpu.assume_multiple %0, 128 : i32
    %c128_i32_0 = arith.constant 128 : i32
    %2 = arith.muli %arg2, %c128_i32_0 : i32
    %3 = tpu.assume_multiple %2, 128 : i32
    %c0_i32 = arith.constant 0 : i32
    %4 = arith.cmpi eq, %arg0, %c0_i32 : i32
    %c0_i32_1 = arith.constant 0 : i32
    %5 = arith.cmpi eq, %arg1, %c0_i32_1 : i32
    %6 = arith.andi %4, %5 : i1
    %c0_i32_2 = arith.constant 0 : i32
    %7 = arith.cmpi eq, %arg2, %c0_i32_2 : i32
    %8 = arith.andi %6, %7 : i1
    %9 = arith.extui %8 : i1 to i32
    %c0_i32_3 = arith.constant 0 : i32
    %10 = arith.cmpi ne, %9, %c0_i32_3 : i32
    scf.if %10 {
      %c0_24 = arith.constant 0 : index
      %c0_25 = arith.constant 0 : index
      %44 = vector.load %arg3[%c0_24, %c0_25] : memref<384x128xbf16, #tpu.memory_space<vmem>>, vector<384x128xbf16>
      %c0_26 = arith.constant 0 : index
      %c0_27 = arith.constant 0 : index
      %45 = vector.load %arg13[%c0_26, %c0_27] : memref<384x128xbf16, #tpu.memory_space<vmem>>, vector<384x128xbf16>
      tpu.vector_store %arg13[%c0_26, %c0_27], %44 {strides = array<i32>} : memref<384x128xbf16, #tpu.memory_space<vmem>>, vector<384x128xbf16>,
      %cst_28 = arith.constant 0.000000e+00 : f32
      %46 = vector.broadcast %cst_28 : f32 to vector<384x1xf32>
      %c0_29 = arith.constant 0 : index
      %c0_30 = arith.constant 0 : index
      %47 = vector.load %arg15[%c0_29, %c0_30] : memref<384x1xf32, #tpu.memory_space<vmem>>, vector<384x1xf32>
      tpu.vector_store %arg15[%c0_29, %c0_30], %46 {strides = array<i32>} : memref<384x1xf32, #tpu.memory_space<vmem>>, vector<384x1xf32>,
      %cst_31 = arith.constant 0.000000e+00 : f32
      %48 = vector.broadcast %cst_31 : f32 to vector<8x128xf32>
      %c0_32 = arith.constant 0 : index
      %c0_33 = arith.constant 0 : index
      %49 = vector.load %arg17[%c0_32, %c0_33] : memref<8x128xf32, #tpu.memory_space<vmem>>, vector<8x128xf32>
      tpu.vector_store %arg17[%c0_32, %c0_33], %48 {strides = array<i32>} : memref<8x128xf32, #tpu.memory_space<vmem>>, vector<8x128xf32>,
    } else {
    }
    %c0_i32_4 = arith.constant 0 : i32
    %11 = arith.cmpi eq, %arg1, %c0_i32_4 : i32
    %c0_i32_5 = arith.constant 0 : i32
    %12 = arith.cmpi eq, %arg2, %c0_i32_5 : i32
    %13 = arith.andi %11, %12 : i1
    %14 = arith.extui %13 : i1 to i32
    %c0_i32_6 = arith.constant 0 : i32
    %15 = arith.cmpi ne, %14, %c0_i32_6 : i32
    scf.if %15 {
      %c0_24 = arith.constant 0 : index
      %c0_25 = arith.constant 0 : index
      %44 = vector.load %arg13[%c0_24, %c0_25] : memref<384x128xbf16, #tpu.memory_space<vmem>>, vector<384x128xbf16>
      %c0_26 = arith.constant 0 : index
      %c0_27 = arith.constant 0 : index
      %c0_28 = arith.constant 0 : index
      %45 = vector.load %arg6[%c0_26, %c0_27, %c0_28] : memref<1x128x384xbf16, #tpu.memory_space<vmem>>, vector<1x128x128xbf16>
      %46 = vector.shape_cast %45 : vector<1x128x128xbf16> to vector<128x128xbf16>
      %cst_29 = arith.constant dense<0.000000e+00> : vector<384x128xf32>
      %47 = tpu.matmul %44, %46, %cst_29 {dimension_numbers = #tpu.dot_dimension_numbers<[1], [0], [0], [1], [0, 0, 1, 1], [], []>} : vector<384x128xbf16>, vector<128x128xbf16>, vector<384x128xf32> -> vector<384x128xf32>
      %c0_30 = arith.constant 0 : index
      %c0_31 = arith.constant 0 : index
      %c0_32 = arith.constant 0 : index
      %48 = vector.load %arg7[%c0_30, %c0_31, %c0_32] : memref<1x1x384xf32, #tpu.memory_space<vmem>>, vector<1x1x128xf32>
      %49 = vector.shape_cast %48 : vector<1x1x128xf32> to vector<1x128xf32>
      %50 = vector.broadcast %49 : vector<1x128xf32> to vector<384x128xf32>
      %51 = arith.addf %47, %50 : vector<384x128xf32>
      %52 = arith.truncf %51 : vector<384x128xf32> to vector<384x128xbf16>
      %c0_33 = arith.constant 0 : index
      %c0_34 = arith.constant 0 : index
      %53 = vector.load %arg14[%c0_33, %c0_34] : memref<384x128xbf16, #tpu.memory_space<vmem>>, vector<384x128xbf16>
      tpu.vector_store %arg14[%c0_33, %c0_34], %52 {strides = array<i32>} : memref<384x128xbf16, #tpu.memory_space<vmem>>, vector<384x128xbf16>,
    } else {
    }
    %c0_i32_7 = arith.constant 0 : i32
    %16 = arith.cmpi eq, %arg2, %c0_i32_7 : i32
    %17 = arith.extui %16 : i1 to i32
    %c0_i32_8 = arith.constant 0 : i32
    %18 = arith.cmpi ne, %17, %c0_i32_8 : i32
    scf.if %18 {
      %cst_24 = arith.constant 0.000000e+00 : f32
      %44 = vector.broadcast %cst_24 : f32 to vector<128x128xf32>
      %c0_25 = arith.constant 0 : index
      %c0_26 = arith.constant 0 : index
      %45 = vector.load %arg16[%c0_25, %c0_26] : memref<128x128xf32, #tpu.memory_space<vmem>>, vector<128x128xf32>
      tpu.vector_store %arg16[%c0_25, %c0_26], %44 {strides = array<i32>} : memref<128x128xf32, #tpu.memory_space<vmem>>, vector<128x128xf32>,
    } else {
    }
    %c0 = arith.constant 0 : index
    %c0_9 = arith.constant 0 : index
    %19 = vector.load %arg4[%c0, %c0_9] : memref<128x128xbf16, #tpu.memory_space<vmem>>, vector<128x128xbf16>
    %c0_10 = arith.constant 0 : index
    %c0_11 = arith.constant 0 : index
    %20 = vector.load %arg16[%c0_10, %c0_11] : memref<128x128xf32, #tpu.memory_space<vmem>>, vector<128x128xf32>
    %21 = arith.index_cast %3 : i32 to index
    %c0_12 = arith.constant 0 : index
    %22 = vector.load %arg14[%21, %c0_12] : memref<384x128xbf16, #tpu.memory_space<vmem>>, vector<128x128xbf16>
    %cst = arith.constant dense<0.000000e+00> : vector<128x128xf32>
    %23 = tpu.matmul %19, %22, %cst {dimension_numbers = #tpu.dot_dimension_numbers<[1], [0], [0], [1], [0, 0, 1, 1], [], []>} : vector<128x128xbf16>, vector<128x128xbf16>, vector<128x128xf32> -> vector<128x128xf32>
    %24 = arith.addf %20, %23 : vector<128x128xf32>
    %c0_13 = arith.constant 0 : index
    %c0_14 = arith.constant 0 : index
    %25 = vector.load %arg16[%c0_13, %c0_14] : memref<128x128xf32, #tpu.memory_space<vmem>>, vector<128x128xf32>
    tpu.vector_store %arg16[%c0_13, %c0_14], %24 {strides = array<i32>} : memref<128x128xf32, #tpu.memory_space<vmem>>, vector<128x128xf32>,
    %c0_i32_15 = arith.constant 0 : i32
    %26 = arith.cmpi eq, %arg0, %c0_i32_15 : i32
    %27 = arith.extui %26 : i1 to i32
    %c0_i32_16 = arith.constant 0 : i32
    %28 = arith.cmpi ne, %27, %c0_i32_16 : i32
    scf.if %28 {
      %44 = arith.index_cast %1 : i32 to index
      %c0_24 = arith.constant 0 : index
      %45 = vector.load %arg15[%44, %c0_24] : memref<384x1xf32, #tpu.memory_space<vmem>>, vector<128x1xf32>
      %46 = arith.extf %19 : vector<128x128xbf16> to vector<128x128xf32>
      %cst_25 = arith.constant dense<0.000000e+00> : vector<128xf32>
      %47 = vector.multi_reduction <add>, %46, %cst_25 [1] : vector<128x128xf32> to vector<128xf32>
      %48 = vector.shape_cast %47 : vector<128xf32> to vector<128x1xf32>
      %49 = arith.addf %45, %48 : vector<128x1xf32>
      %50 = arith.index_cast %1 : i32 to index
      %c0_26 = arith.constant 0 : index
      %51 = vector.load %arg15[%50, %c0_26] : memref<384x1xf32, #tpu.memory_space<vmem>>, vector<128x1xf32>
      tpu.vector_store %arg15[%50, %c0_26], %49 {strides = array<i32>} : memref<384x1xf32, #tpu.memory_space<vmem>>, vector<128x1xf32>,
    } else {
    }
    %c2_i32 = arith.constant 2 : i32
    %29 = arith.cmpi eq, %arg2, %c2_i32 : i32
    %30 = arith.extui %29 : i1 to i32
    %c0_i32_17 = arith.constant 0 : i32
    %31 = arith.cmpi ne, %30, %c0_i32_17 : i32
    scf.if %31 {
      %44 = arith.index_cast %1 : i32 to index
      %c0_24 = arith.constant 0 : index
      %45 = vector.load %arg13[%44, %c0_24] : memref<384x128xbf16, #tpu.memory_space<vmem>>, vector<128x128xbf16>
      %c0_25 = arith.constant 0 : index
      %c0_26 = arith.constant 0 : index
      %c128 = arith.constant 128 : index
      %46 = vector.load %arg6[%c0_25, %c0_26, %c128] : memref<1x128x384xbf16, #tpu.memory_space<vmem>>, vector<1x128x256xbf16>
      %47 = vector.shape_cast %46 : vector<1x128x256xbf16> to vector<128x256xbf16>
      %cst_27 = arith.constant dense<0.000000e+00> : vector<128x256xf32>
      %48 = tpu.matmul %45, %47, %cst_27 {dimension_numbers = #tpu.dot_dimension_numbers<[1], [0], [0], [1], [0, 0, 1, 1], [], []>} : vector<128x128xbf16>, vector<128x256xbf16>, vector<128x256xf32> -> vector<128x256xf32>
      %c0_28 = arith.constant 0 : index
      %c0_29 = arith.constant 0 : index
      %c128_30 = arith.constant 128 : index
      %49 = vector.load %arg7[%c0_28, %c0_29, %c128_30] : memref<1x1x384xf32, #tpu.memory_space<vmem>>, vector<1x1x256xf32>
      %50 = vector.shape_cast %49 : vector<1x1x256xf32> to vector<1x256xf32>
      %51 = vector.broadcast %50 : vector<1x256xf32> to vector<128x256xf32>
      %52 = arith.addf %48, %51 : vector<128x256xf32>
      %53 = vector.extract_strided_slice %52 {offsets = [0, 0], sizes = [128, 128], strides = [1, 1]} : vector<128x256xf32> to vector<128x128xf32>
      %54 = vector.extract_strided_slice %52 {offsets = [0, 128], sizes = [128, 128], strides = [1, 1]} : vector<128x256xf32> to vector<128x128xf32>
      %55 = arith.index_cast %1 : i32 to index
      %c0_31 = arith.constant 0 : index
      %56 = vector.load %arg15[%55, %c0_31] : memref<384x1xf32, #tpu.memory_space<vmem>>, vector<128x1xf32>
      %c0_32 = arith.constant 0 : index
      %c0_33 = arith.constant 0 : index
      %57 = vector.load %arg16[%c0_32, %c0_33] : memref<128x128xf32, #tpu.memory_space<vmem>>, vector<128x128xf32>
      %58 = vector.broadcast %56 : vector<128x1xf32> to vector<128x128xf32>
      %59 = arith.mulf %58, %53 : vector<128x128xf32>
      %60 = arith.subf %57, %59 : vector<128x128xf32>
      %61 = arith.addf %60, %54 : vector<128x128xf32>
      %cst_34 = arith.constant 0.000000e+00 : f32
      %62 = vector.broadcast %cst_34 : f32 to vector<128x128xf32>
      %63 = arith.maximumf %61, %62 : vector<128x128xf32>
      %64 = arith.truncf %63 : vector<128x128xf32> to vector<128x128xbf16>
      %65 = arith.index_cast %1 : i32 to index
      %c0_35 = arith.constant 0 : index
      %66 = vector.load %arg13[%65, %c0_35] : memref<384x128xbf16, #tpu.memory_space<vmem>>, vector<128x128xbf16>
      tpu.vector_store %arg13[%65, %c0_35], %64 {strides = array<i32>} : memref<384x128xbf16, #tpu.memory_space<vmem>>, vector<128x128xbf16>,
      %67 = arith.truncf %63 : vector<128x128xf32> to vector<128x128xbf16>
      %c0_36 = arith.constant 0 : index
      %c0_37 = arith.constant 0 : index
      %68 = vector.load %arg10[%c0_36, %c0_37] : memref<128x128xbf16, #tpu.memory_space<vmem>>, vector<128x128xbf16>
      tpu.vector_store %arg10[%c0_36, %c0_37], %67 {strides = array<i32>} : memref<128x128xbf16, #tpu.memory_space<vmem>>, vector<128x128xbf16>,
    } else {
    }
    %c2_i32_18 = arith.constant 2 : i32
    %32 = arith.cmpi eq, %arg2, %c2_i32_18 : i32
    %c1_i32 = arith.constant 1 : i32
    %33 = arith.cmpi eq, %arg0, %c1_i32 : i32
    %34 = arith.andi %32, %33 : i1
    %35 = arith.extui %34 : i1 to i32
    %c0_i32_19 = arith.constant 0 : i32
    %36 = arith.cmpi ne, %35, %c0_i32_19 : i32
    scf.if %36 {
      %c0_24 = arith.constant 0 : index
      %c0_25 = arith.constant 0 : index
      %44 = vector.load %arg17[%c0_24, %c0_25] : memref<8x128xf32, #tpu.memory_space<vmem>>, vector<8x128xf32>
      %c0_26 = arith.constant 0 : index
      %c0_27 = arith.constant 0 : index
      %45 = vector.load %arg5[%c0_26, %c0_27] : memref<8x128xbf16, #tpu.memory_space<vmem>>, vector<8x128xbf16>
      %46 = arith.index_cast %1 : i32 to index
      %c0_28 = arith.constant 0 : index
      %47 = vector.load %arg13[%46, %c0_28] : memref<384x128xbf16, #tpu.memory_space<vmem>>, vector<128x128xbf16>
      %cst_29 = arith.constant dense<0.000000e+00> : vector<8x128xf32>
      %48 = tpu.matmul %45, %47, %cst_29 {dimension_numbers = #tpu.dot_dimension_numbers<[1], [0], [0], [1], [0, 0, 1, 1], [], []>} : vector<8x128xbf16>, vector<128x128xbf16>, vector<8x128xf32> -> vector<8x128xf32>
      %49 = arith.addf %44, %48 : vector<8x128xf32>
      %c0_30 = arith.constant 0 : index
      %c0_31 = arith.constant 0 : index
      %50 = vector.load %arg17[%c0_30, %c0_31] : memref<8x128xf32, #tpu.memory_space<vmem>>, vector<8x128xf32>
      tpu.vector_store %arg17[%c0_30, %c0_31], %49 {strides = array<i32>} : memref<8x128xf32, #tpu.memory_space<vmem>>, vector<8x128xf32>,
    } else {
    }
    %c2_i32_20 = arith.constant 2 : i32
    %37 = arith.cmpi eq, %arg2, %c2_i32_20 : i32
    %c1_i32_21 = arith.constant 1 : i32
    %38 = arith.cmpi eq, %arg0, %c1_i32_21 : i32
    %39 = arith.andi %37, %38 : i1
    %c2_i32_22 = arith.constant 2 : i32
    %40 = arith.cmpi eq, %arg1, %c2_i32_22 : i32
    %41 = arith.andi %39, %40 : i1
    %42 = arith.extui %41 : i1 to i32
    %c0_i32_23 = arith.constant 0 : i32
    %43 = arith.cmpi ne, %42, %c0_i32_23 : i32
    scf.if %43 {
      %c0_24 = arith.constant 0 : index
      %c0_25 = arith.constant 0 : index
      %44 = vector.load %arg17[%c0_24, %c0_25] : memref<8x128xf32, #tpu.memory_space<vmem>>, vector<8x128xf32>
      %c0_26 = arith.constant 0 : index
      %c0_27 = arith.constant 0 : index
      %45 = vector.load %arg11[%c0_26, %c0_27] : memref<8x128xf32, #tpu.memory_space<vmem>>, vector<8x128xf32>
      tpu.vector_store %arg11[%c0_26, %c0_27], %44 {strides = array<i32>} : memref<8x128xf32, #tpu.memory_space<vmem>>, vector<8x128xf32>,
      %46 = arith.truncf %44 : vector<8x128xf32> to vector<8x128xbf16>
      %c0_28 = arith.constant 0 : index
      %c0_29 = arith.constant 0 : index
      %47 = vector.load %arg8[%c0_28, %c0_29] : memref<256x128xbf16, #tpu.memory_space<vmem>>, vector<128x128xbf16>
      %cst_30 = arith.constant dense<0.000000e+00> : vector<8x128xf32>
      %48 = tpu.matmul %46, %47, %cst_30 {dimension_numbers = #tpu.dot_dimension_numbers<[1], [0], [0], [1], [0, 0, 1, 1], [], []>} : vector<8x128xbf16>, vector<128x128xbf16>, vector<8x128xf32> -> vector<8x128xf32>
      %c0_31 = arith.constant 0 : index
      %c0_32 = arith.constant 0 : index
      %49 = vector.load %arg9[%c0_31, %c0_32] : memref<8x128xf32, #tpu.memory_space<vmem>>, vector<1x128xf32>
      %50 = vector.broadcast %49 : vector<1x128xf32> to vector<8x128xf32>
      %51 = arith.addf %48, %50 : vector<8x128xf32>
      %cst_33 = arith.constant 0.000000e+00 : f32
      %52 = vector.broadcast %cst_33 : f32 to vector<8x128xf32>
      %53 = arith.maximumf %51, %52 : vector<8x128xf32>
      %54 = arith.truncf %53 : vector<8x128xf32> to vector<8x128xbf16>
      %c128 = arith.constant 128 : index
      %c0_34 = arith.constant 0 : index
      %55 = vector.load %arg8[%c128, %c0_34] : memref<256x128xbf16, #tpu.memory_space<vmem>>, vector<128x128xbf16>
      %cst_35 = arith.constant dense<0.000000e+00> : vector<8x128xf32>
      %56 = tpu.matmul %54, %55, %cst_35 {dimension_numbers = #tpu.dot_dimension_numbers<[1], [0], [0], [1], [0, 0, 1, 1], [], []>} : vector<8x128xbf16>, vector<128x128xbf16>, vector<8x128xf32> -> vector<8x128xf32>
      %c1 = arith.constant 1 : index
      %c0_36 = arith.constant 0 : index
      %57 = vector.load %arg9[%c1, %c0_36] : memref<8x128xf32, #tpu.memory_space<vmem>>, vector<1x128xf32>
      %58 = vector.broadcast %57 : vector<1x128xf32> to vector<8x128xf32>
      %59 = arith.addf %56, %58 : vector<8x128xf32>
      %c0_37 = arith.constant 0 : index
      %c0_38 = arith.constant 0 : index
      %60 = vector.load %arg12[%c0_37, %c0_38] : memref<8x128xf32, #tpu.memory_space<vmem>>, vector<8x128xf32>
      tpu.vector_store %arg12[%c0_37, %c0_38], %59 {strides = array<i32>} : memref<8x128xf32, #tpu.memory_space<vmem>>, vector<8x128xf32>,
    } else {
    }
    return
  }
  func.func @transform_0(%arg0: i32, %arg1: i32, %arg2: i32) -> (i32, i32) {
    %c0_i32 = arith.constant 0 : i32
    %c0_i32_0 = arith.constant 0 : i32
    %c0_i32_1 = arith.constant 0 : i32
    return %c0_i32, %c0_i32_0 : i32, i32
  }
  func.func @transform_1(%arg0: i32, %arg1: i32, %arg2: i32) -> (i32, i32) {
    %c0_i32 = arith.constant 0 : i32
    return %arg1, %arg2 : i32, i32
  }
  func.func @transform_2(%arg0: i32, %arg1: i32, %arg2: i32) -> (i32, i32) {
    %c0_i32 = arith.constant 0 : i32
    %c0_i32_0 = arith.constant 0 : i32
    return %c0_i32, %arg1 : i32, i32
  }
  func.func @transform_3(%arg0: i32, %arg1: i32, %arg2: i32) -> (i32, i32, i32) {
    %c0_i32 = arith.constant 0 : i32
    %c0_i32_0 = arith.constant 0 : i32
    %c0_i32_1 = arith.constant 0 : i32
    return %arg0, %c0_i32, %c0_i32_0 : i32, i32, i32
  }
  func.func @transform_4(%arg0: i32, %arg1: i32, %arg2: i32) -> (i32, i32, i32) {
    %c0_i32 = arith.constant 0 : i32
    %c0_i32_0 = arith.constant 0 : i32
    %c0_i32_1 = arith.constant 0 : i32
    return %arg0, %c0_i32, %c0_i32_0 : i32, i32, i32
  }
  func.func @transform_5(%arg0: i32, %arg1: i32, %arg2: i32) -> (i32, i32) {
    %c0_i32 = arith.constant 0 : i32
    %c0_i32_0 = arith.constant 0 : i32
    %c0_i32_1 = arith.constant 0 : i32
    return %c0_i32, %c0_i32_0 : i32, i32
  }
  func.func @transform_6(%arg0: i32, %arg1: i32, %arg2: i32) -> (i32, i32) {
    %c0_i32 = arith.constant 0 : i32
    %c0_i32_0 = arith.constant 0 : i32
    %c0_i32_1 = arith.constant 0 : i32
    return %c0_i32, %c0_i32_0 : i32, i32
  }
  func.func @transform_7(%arg0: i32, %arg1: i32, %arg2: i32) -> (i32, i32) {
    %c0_i32 = arith.constant 0 : i32
    %c0_i32_0 = arith.constant 0 : i32
    return %arg1, %c0_i32 : i32, i32
  }
  func.func @transform_8(%arg0: i32, %arg1: i32, %arg2: i32) -> (i32, i32) {
    %c0_i32 = arith.constant 0 : i32
    %c0_i32_0 = arith.constant 0 : i32
    %c0_i32_1 = arith.constant 0 : i32
    return %c0_i32, %c0_i32_0 : i32, i32
  }
  func.func @transform_9(%arg0: i32, %arg1: i32, %arg2: i32) -> (i32, i32) {
    %c0_i32 = arith.constant 0 : i32
    %c0_i32_0 = arith.constant 0 : i32
    %c0_i32_1 = arith.constant 0 : i32
    return %c0_i32, %c0_i32_0 : i32, i32
  }
}

</mosaic_0001>

<bundles_post_ra>
// kernel: spmotif_forward.1
= control target key start
LH: loop header
LB: loop body
LE: loop exit
PB: predicated region body
PF: predicated region fallthrough
CT: control target
= control target key end

     0   :  { %s4673_s0 = inlined_call_operand.vmem [shape: bf16[384,128], index: 0, kind: input, shape index: {}]   ;;  %s4674_s1 = inlined_call_operand.vmem [shape: bf16[384,384], index: 1, kind: input, shape index: {}]   ;;  %s4675_s2 = inlined_call_operand.vmem [shape: bf16[8,384], index: 2, kind: input, shape index: {}]   ;;  %s4676_s3 = inlined_call_operand.vmem [shape: bf16[2,128,384], index: 3, kind: input, shape index: {}]   ;;  %s4677_s4 = inlined_call_operand.vmem [shape: f32[2,1,384], index: 4, kind: input, shape index: {}]   ;;  %s4678_s5 = inlined_call_operand.vmem [shape: bf16[256,128], index: 5, kind: input, shape index: {}]   ;;  %s4679_s6 = inlined_call_operand.vmem [shape: f32[8,128], index: 6, kind: input, shape index: {}]   ;;  %s4680_s7 = inlined_call_operand.vmem [shape: bf16[384,128], index: 7, kind: output, shape index: {0}]   ;;  %s4681_s8 = inlined_call_operand.hbm [shape: f32[8,128], index: 8, kind: output, shape index: {1}]   ;;  %s4682_s9 = inlined_call_operand.vmem [shape: f32[8,128], index: 9, kind: output, shape index: {2}]  }
   0x1   :  { %4688 = sst [smem:[#allocation18_spill]] %s4674_s1 }
   0x2   :  { %15 = vsyncpa [#allocation9], 0  ;;  %s3999_s30 = smov 0   ;;  %s4001_s10 = smov 0  }
   0x3   :  { %s4003_s11 = smov 0   ;;  %s4005_s12 = smov 0  }
   0x4   :  { %s4007_s13 = smov 0   ;;  %s4009_s14 = smov 0  }
   0x5   :  { %s4011_s15 = smov 0   ;;  %s4013_s16 = smov 0  }
   0x6   :  { %s4015_s17 = smov 0  }
   0x7 LB: > { %4689 = sst [smem:[#allocation11_spill]] %s3927_s14  ;;  %s33_s19 = sadd.s32 1, %s3927_s14  ;;  %s3939_s17 = sphi %s4015_s17, %s21_s17   ;;  %s3935_s16 = sphi %s4013_s16, %s4709_s16   ;;  %s3931_s15 = sphi %s4011_s15, %s4705_s15   ;;  %s3927_s14 = sphi %s4009_s14, %s4704_s14   ;;  %s3923_s13 = sphi %s4007_s13, %s4703_s13   ;;  %s3919_s12 = sphi %s4005_s12, %s4702_s12   ;;  %s3915_s11 = sphi %s4003_s11, %s4701_s11   ;;  %s3911_s10 = sphi %s4001_s10, %s4708_s10   ;;  %s3907_s30 = sphi %s3999_s30, %s4707_s30  }
   0x8   : > { %4690 = sst [smem:[#allocation12_spill]] %s3931_s15  ;;  %p34_p0 = scmp.ge.s32.totalorder %s33_s19, 3 }
   0x9   : > { %4691 = sst [smem:[#allocation13_spill]] %s3935_s16  ;;  %s36_s20 = sadd.s32 1, %s3931_s15 }
   0xa   : > { %s4711_s19 = smov (%p34_p0, %s33_s19), 0  ;;  %s4713_s20 = smov (!%p34_p0, %s36_s20), %s3931_s15 }
   0xb   : > { %4692 = sst [smem:[#allocation14_spill]] %s4711_s19  ;;  %s40_s21 = sadd.s32 1, %s3935_s16 }
   0xc   : > { %p77_p1 = scmp.ne.s32.totalorder %s3911_s10, %s3907_s30  ;;  %p38_p2 = scmp.ge.s32.totalorder %s4713_s20, 3 }
   0xd   : > { %p78_p3 = scmp.eq.s32.totalorder %s3939_s17, 0  ;;  %s66_s22 = ssub.s32 %s3927_s14, %s4711_s19 }
   0xe   : > { %s70_s23 = sadd.s32 1, %s3911_s10  ;;  %s4715_s20 = smov (%p38_p2, %s4713_s20), 0 }
   0xf   : > { %4693 = sst [smem:[#allocation15_spill]] %s4715_s20  ;;  %s4717_s21 = smov (!%p38_p2, %s40_s21), %s3935_s16 }
  0x10   : > { %s65_s24 = ssub.s32 %s3931_s15, %s4715_s20  ;;  %p79_p4 = por %p78_p3, %p77_p1 }
  0x11   : > { %p42_p5 = scmp.ge.s32.totalorder %s4717_s21, 2  ;;  %s67_s25 = sor.u32 %s66_s22, %s65_s24 }
  0x12   : > { %p68_p6 = scmp.eq.s32.totalorder %s67_s25, 0  ;;  %p2872_p7 = scmp.ge.s32.totalorder %s3939_s17, 18 }
  0x13   : > { %s4719_s21 = smov (%p42_p5, %s4717_s21), 0 }
  0x14   : > { %4694 = sst [smem:[#allocation16_spill]] %s4719_s21  ;;  %300 = sbr.rel (%p2872_p7) target bundleno = 45 (0x2d), region = 28 }
  0x15   : > { %s4065_s26 = scalar_select %p68_p6, %s3911_s10, %s70_s23  }
  0x17   : > { %4695 = sst [smem:[#allocation17_spill]] %s4065_s26 }
  0x19   : > { %303 = sbr.rel (!%p79_p4) target bundleno = 45 (0x2d), region = 32  ;;  %s305_s27 = sand.u32 (%p79_p4), 1, %s3911_s10  }
  0x1a   : > { %s3638_s28 = smul.u32 (%p79_p4), 48, %s3931_s15  ;;  %s2873_s29 = sshll.u32 (%p79_p4), %s305_s27, 6 }
  0x1b   : > { %s4696_s1 = sld [smem:[#allocation18_spill]] (%p79_p4)  ;;  %s307_s23 = scalar_lea.vmem (%p79_p4), [#allocation7], %s2873_s29 }
  0x1c   : > { %s310_s18 = sadd.s32 (%p79_p4), %s3927_s14, %s3638_s28 }
  0x1d   : > { %s2876_s20 = sshll.u32 (%p79_p4), %s310_s18, 2 }
  0x21   : > { %s4074_s22 = scalar_lea.vmem %s4696_s1, %s2876_s20 }
  0x22   : > { %v329_v0 = vld [vmem:[%s4074_s22] sm:$0xf]  ;;  %v331_v1 = vld [vmem:[%s4074_s22 + $0xc] sm:$0xf]  ;;  %v333_v2 = vld [vmem:[%s4074_s22 + $0x18] sm:$0xf] }
  0x23   : > { %330 = vst [vmem:[%s307_s23] sm:$0xf] %v329_v0  ;;  %332 = vst [vmem:[%s307_s23 + $0x4] sm:$0xf] %v331_v1  ;;  %v335_v3 = vld [vmem:[%s4074_s22 + $0x24] sm:$0xf] }
  0x24   : > { %334 = vst [vmem:[%s307_s23 + $0x8] sm:$0xf] %v333_v2  ;;  %v337_v4 = vld [vmem:[%s4074_s22 + $0x30] sm:$0xf]  ;;  %v339_v5 = vld [vmem:[%s4074_s22 + $0x3c] sm:$0xf] }
  0x25   : > { %336 = vst [vmem:[%s307_s23 + $0xc] sm:$0xf] %v335_v3  ;;  %338 = vst [vmem:[%s307_s23 + $0x10] sm:$0xf] %v337_v4  ;;  %v341_v6 = vld [vmem:[%s4074_s22 + $0x48] sm:$0xf] }
  0x26   : > { %340 = vst [vmem:[%s307_s23 + $0x14] sm:$0xf] %v339_v5  ;;  %v343_v7 = vld [vmem:[%s4074_s22 + $0x54] sm:$0xf]  ;;  %v345_v8 = vld [vmem:[%s4074_s22 + $0x60] sm:$0xf] }
  0x27   : > { %342 = vst [vmem:[%s307_s23 + $0x18] sm:$0xf] %v341_v6  ;;  %344 = vst [vmem:[%s307_s23 + $0x1c] sm:$0xf] %v343_v7  ;;  %v347_v9 = vld [vmem:[%s4074_s22 + $0x6c] sm:$0xf] }
  0x28   : > { %346 = vst [vmem:[%s307_s23 + $0x20] sm:$0xf] %v345_v8  ;;  %v349_v10 = vld [vmem:[%s4074_s22 + $0x78] sm:$0xf]  ;;  %v351_v11 = vld [vmem:[%s4074_s22 + $0x84] sm:$0xf] }
  0x29   : > { %348 = vst [vmem:[%s307_s23 + $0x24] sm:$0xf] %v347_v9  ;;  %350 = vst [vmem:[%s307_s23 + $0x28] sm:$0xf] %v349_v10  ;;  %v353_v12 = vld [vmem:[%s4074_s22 + $0x90] sm:$0xf] }
  0x2a   : > { %352 = vst [vmem:[%s307_s23 + $0x2c] sm:$0xf] %v351_v11  ;;  %v355_v13 = vld [vmem:[%s4074_s22 + $0x9c] sm:$0xf]  ;;  %v357_v14 = vld [vmem:[%s4074_s22 + $0xa8] sm:$0xf] }
  0x2b   : > { %354 = vst [vmem:[%s307_s23 + $0x30] sm:$0xf] %v353_v12  ;;  %356 = vst [vmem:[%s307_s23 + $0x34] sm:$0xf] %v355_v13  ;;  %v359_v15 = vld [vmem:[%s4074_s22 + $0xb4] sm:$0xf] }
  0x2c   : > { %358 = vst [vmem:[%s307_s23 + $0x38] sm:$0xf] %v357_v14  ;;  %360 = vst [vmem:[%s307_s23 + $0x3c] sm:$0xf] %v359_v15 }
  0x2d PF: > { %p2877_p8 = scmp.ge.s32.totalorder %s3939_s17, 1  ;;  %p437_p9 = scmp.lt.s32.totalorder %s3939_s17, 19 }
  0x2f   : > { %p438_p10 = pnand %p2877_p8, %p437_p9 }
  0x30   : > { %s444_s16 = sand.u32 (!%p438_p10), 1, %s3907_s30   ;;  %p493_p11 = scmp.lt.s32.totalorder (!%p438_p10), %s3919_s12, 2 }
  0x31   : > { %441 = sbr.rel (%p438_p10) target bundleno = 1798 (0x706), region = 85  ;;  %s2878_s18 = sshll.u32 (!%p438_p10), %s444_s16, 6 }
  0x32   : > { %p497_p12 = scmp.lt.s32.totalorder (!%p438_p10), %s3923_s13, 1  ;;  %s2881_s19 = sshll.u32 (!%p438_p10), %s3919_s12, 4 }
  0x33   : > { %p507_p13 = scmp.lt.s32.totalorder (!%p438_p10), %s2881_s19, 47  ;;  %s4106_s23 = sshll.u32 (!%p438_p10), %s3919_s12, 7 }
  0x34   : > { %s2884_s15 = sshll.u32 (!%p438_p10), %s3915_s11, 7  ;;  %p515_p0 = scmp.eq.s32.totalorder (!%p438_p10), %s3923_s13, 0 }
  0x35   : > { %p516_p1 = scmp.eq.s32.totalorder (!%p438_p10), %s3919_s12, 0  ;;  %p519_p2 = scmp.eq.s32.totalorder (!%p438_p10), %s3915_s11, 0 }
  0x36   : > { %s494_s20 = scalar_select %p493_p11, %s3919_s12, 2 }
  0x37   : > { %s498_s24 = scalar_select %p497_p12, %s3923_s13, 1 }
  0x38   : > { %s2879_s25 = sshll.u32 %s494_s20, 2  ;;  %s4721_s19 = smov (!%p507_p13, %s2881_s19), 47 }
  0x39   : > { %s4103_s29 = scalar_lea.vmem %s4675_s2, %s2879_s25  ;;  %s3639_s22 = smul.u32 192, %s498_s24 }
  0x3a   : > { %s3640_s30 = smul.u32 3, %s498_s24  ;;  %s2882_s25 = sshll.u32 %s4721_s19, 2 }
  0x3b   : > { %s4111_s21 = scalar_lea.vmem %s4676_s3, %s3639_s22  ;;  %s4125_s28 = scalar_lea.vmem %s4680_s7, %s2882_s25 }
  0x3c   : > { %s4117_s20 = scalar_lea.vmem %s4677_s4, %s3640_s30  ;;  %p517_p3 = pnand %p516_p1, %p515_p0 }
  0x3d   : > { %s4131_s1 = scalar_lea.vmem [#allocation7], %s2878_s18 }
  0x3e   : > { %p518_p4 = pneg %p517_p3 }
  0x40   : > { %p520_p5 = pnand %p519_p2, %p518_p4 }
  0x42   : > { %523 = sbr.rel (%p520_p5) target bundleno = 109 (0x6d), region = 93 }
  0x47   : > { %v524_v16 = vld [vmem:[%s4673_s0] sm:$0xff]   ;;  %v526_v17 = vld [vmem:[%s4673_s0 + $0x8] sm:$0xff]   ;;  %v528_v18 = vld [vmem:[%s4673_s0 + $0x10] sm:$0xff]   ;;  %vm620_vm0 = vcmask 7168   ;;  %v3941_v22 = vmov 0.0  }
  0x48   : > { %572 = vst [vmem:[#allocation2] sm:$0xff] %v524_v16   ;;  %574 = vst [vmem:[#allocation2 + $0x8] sm:$0xff] %v526_v17   ;;  %v530_v19 = vld [vmem:[%s4673_s0 + $0x18] sm:$0xff]   ;;  %v532_v20 = vld [vmem:[%s4673_s0 + $0x20] sm:$0xff]  }
  0x49   : > { %576 = vst [vmem:[#allocation2 + $0x10] sm:$0xff] %v528_v18   ;;  %v534_v21 = vld [vmem:[%s4673_s0 + $0x28] sm:$0xff]   ;;  %621 = vst.msk [vmem:[#allocation4] sm:$0xff] %vm620_vm0, %v3941_v22  ;;  %v536_v23 = vld [vmem:[%s4673_s0 + $0x30] sm:$0xff]  }
  0x4a   : > { %622 = vst.msk [vmem:[#allocation4 + $0x8] sm:$0xff] %vm620_vm0, %v3941_v22  ;;  %623 = vst.msk [vmem:[#allocation4 + $0x10] sm:$0xff] %vm620_vm0, %v3941_v22  ;;  %v538_v24 = vld [vmem:[%s4673_s0 + $0x38] sm:$0xff]   ;;  %v540_v25 = vld [vmem:[%s4673_s0 + $0x40] sm:$0xff]  }
  0x4b   : > { %624 = vst.msk [vmem:[#allocation4 + $0x18] sm:$0xff] %vm620_vm0, %v3941_v22  ;;  %625 = vst.msk [vmem:[#allocation4 + $0x20] sm:$0xff] %vm620_vm0, %v3941_v22  ;;  %v542_v26 = vld [vmem:[%s4673_s0 + $0x48] sm:$0xff]   ;;  %v544_v27 = vld [vmem:[%s4673_s0 + $0x50] sm:$0xff]  }
  0x4c   : > { %626 = vst.msk [vmem:[#allocation4 + $0x28] sm:$0xff] %vm620_vm0, %v3941_v22  ;;  %627 = vst.msk [vmem:[#allocation4 + $0x30] sm:$0xff] %vm620_vm0, %v3941_v22  ;;  %v546_v28 = vld [vmem:[%s4673_s0 + $0x58] sm:$0xff]   ;;  %v548_v29 = vld [vmem:[%s4673_s0 + $0x60] sm:$0xff]  }
  0x4d   : > { %628 = vst.msk [vmem:[#allocation4 + $0x38] sm:$0xff] %vm620_vm0, %v3941_v22  ;;  %629 = vst.msk [vmem:[#allocation4 + $0x40] sm:$0xff] %vm620_vm0, %v3941_v22  ;;  %v550_v30 = vld [vmem:[%s4673_s0 + $0x68] sm:$0xff]   ;;  %v552_v31 = vld [vmem:[%s4673_s0 + $0x70] sm:$0xff]  }
  0x4e   : > { %630 = vst.msk [vmem:[#allocation4 + $0x48] sm:$0xff] %vm620_vm0, %v3941_v22  ;;  %631 = vst.msk [vmem:[#allocation4 + $0x50] sm:$0xff] %vm620_vm0, %v3941_v22  ;;  %v554_v32 = vld [vmem:[%s4673_s0 + $0x78] sm:$0xff]   ;;  %v556_v33 = vld [vmem:[%s4673_s0 + $0x80] sm:$0xff]  }
  0x4f   : > { %632 = vst.msk [vmem:[#allocation4 + $0x58] sm:$0xff] %vm620_vm0, %v3941_v22  ;;  %633 = vst.msk [vmem:[#allocation4 + $0x60] sm:$0xff] %vm620_vm0, %v3941_v22  ;;  %v558_v34 = vld [vmem:[%s4673_s0 + $0x88] sm:$0xff]   ;;  %v560_v35 = vld [vmem:[%s4673_s0 + $0x90] sm:$0xff]  }
  0x50   : > { %634 = vst.msk [vmem:[#allocation4 + $0x68] sm:$0xff] %vm620_vm0, %v3941_v22  ;;  %635 = vst.msk [vmem:[#allocation4 + $0x70] sm:$0xff] %vm620_vm0, %v3941_v22  ;;  %v562_v36 = vld [vmem:[%s4673_s0 + $0x98] sm:$0xff]   ;;  %v564_v37 = vld [vmem:[%s4673_s0 + $0xa0] sm:$0xff]  }
  0x51   : > { %636 = vst.msk [vmem:[#allocation4 + $0x78] sm:$0xff] %vm620_vm0, %v3941_v22  ;;  %637 = vst.msk [vmem:[#allocation4 + $0x80] sm:$0xff] %vm620_vm0, %v3941_v22  ;;  %v566_v38 = vld [vmem:[%s4673_s0 + $0xa8] sm:$0xff]   ;;  %v568_v39 = vld [vmem:[%s4673_s0 + $0xb0] sm:$0xff]  }
  0x52   : > { %638 = vst.msk [vmem:[#allocation4 + $0x88] sm:$0xff] %vm620_vm0, %v3941_v22  ;;  %639 = vst.msk [vmem:[#allocation4 + $0x90] sm:$0xff] %vm620_vm0, %v3941_v22  ;;  %v570_v40 = vld [vmem:[%s4673_s0 + $0xb8] sm:$0xff]  }
  0x53   : > { %640 = vst.msk [vmem:[#allocation4 + $0x98] sm:$0xff] %vm620_vm0, %v3941_v22  ;;  %641 = vst.msk [vmem:[#allocation4 + $0xa0] sm:$0xff] %vm620_vm0, %v3941_v22 }
  0x54   : > { %642 = vst.msk [vmem:[#allocation4 + $0xa8] sm:$0xff] %vm620_vm0, %v3941_v22  ;;  %643 = vst.msk [vmem:[#allocation4 + $0xb0] sm:$0xff] %vm620_vm0, %v3941_v22 }
  0x55   : > { %644 = vst.msk [vmem:[#allocation4 + $0xb8] sm:$0xff] %vm620_vm0, %v3941_v22  ;;  %645 = vst.msk [vmem:[#allocation4 + $0xc0] sm:$0xff] %vm620_vm0, %v3941_v22 }
  0x56   : > { %646 = vst.msk [vmem:[#allocation4 + $0xc8] sm:$0xff] %vm620_vm0, %v3941_v22  ;;  %647 = vst.msk [vmem:[#allocation4 + $0xd0] sm:$0xff] %vm620_vm0, %v3941_v22 }
  0x57   : > { %648 = vst.msk [vmem:[#allocation4 + $0xd8] sm:$0xff] %vm620_vm0, %v3941_v22  ;;  %649 = vst.msk [vmem:[#allocation4 + $0xe0] sm:$0xff] %vm620_vm0, %v3941_v22 }
  0x58   : > { %650 = vst.msk [vmem:[#allocation4 + $0xe8] sm:$0xff] %vm620_vm0, %v3941_v22  ;;  %651 = vst.msk [vmem:[#allocation4 + $0xf0] sm:$0xff] %vm620_vm0, %v3941_v22 }
  0x59   : > { %652 = vst.msk [vmem:[#allocation4 + $0xf8] sm:$0xff] %vm620_vm0, %v3941_v22  ;;  %653 = vst.msk [vmem:[#allocation4 + $0x100] sm:$0xff] %vm620_vm0, %v3941_v22 }
  0x5a   : > { %654 = vst.msk [vmem:[#allocation4 + $0x108] sm:$0xff] %vm620_vm0, %v3941_v22  ;;  %655 = vst.msk [vmem:[#allocation4 + $0x110] sm:$0xff] %vm620_vm0, %v3941_v22 }
  0x5b   : > { %656 = vst.msk [vmem:[#allocation4 + $0x118] sm:$0xff] %vm620_vm0, %v3941_v22  ;;  %657 = vst.msk [vmem:[#allocation4 + $0x120] sm:$0xff] %vm620_vm0, %v3941_v22 }
  0x5c   : > { %658 = vst.msk [vmem:[#allocation4 + $0x128] sm:$0xff] %vm620_vm0, %v3941_v22  ;;  %659 = vst.msk [vmem:[#allocation4 + $0x130] sm:$0xff] %vm620_vm0, %v3941_v22 }
  0x5d   : > { %660 = vst.msk [vmem:[#allocation4 + $0x138] sm:$0xff] %vm620_vm0, %v3941_v22  ;;  %661 = vst.msk [vmem:[#allocation4 + $0x140] sm:$0xff] %vm620_vm0, %v3941_v22 }
  0x5e   : > { %662 = vst.msk [vmem:[#allocation4 + $0x148] sm:$0xff] %vm620_vm0, %v3941_v22  ;;  %663 = vst.msk [vmem:[#allocation4 + $0x150] sm:$0xff] %vm620_vm0, %v3941_v22 }
  0x5f   : > { %664 = vst.msk [vmem:[#allocation4 + $0x158] sm:$0xff] %vm620_vm0, %v3941_v22  ;;  %665 = vst.msk [vmem:[#allocation4 + $0x160] sm:$0xff] %vm620_vm0, %v3941_v22 }
  0x60   : > { %666 = vst.msk [vmem:[#allocation4 + $0x168] sm:$0xff] %vm620_vm0, %v3941_v22  ;;  %667 = vst.msk [vmem:[#allocation4 + $0x170] sm:$0xff] %vm620_vm0, %v3941_v22 }
  0x61   : > { %668 = vst.msk [vmem:[#allocation4 + $0x178] sm:$0xff] %vm620_vm0, %v3941_v22  ;;  %669 = vst [vmem:[#allocation6] sm:$0xff] %v3941_v22 }
  0x62   : > { %578 = vst [vmem:[#allocation2 + $0x18] sm:$0xff] %v530_v19   ;;  %580 = vst [vmem:[#allocation2 + $0x20] sm:$0xff] %v532_v20  }
  0x63   : > { %582 = vst [vmem:[#allocation2 + $0x28] sm:$0xff] %v534_v21   ;;  %584 = vst [vmem:[#allocation2 + $0x30] sm:$0xff] %v536_v23  }
  0x64   : > { %586 = vst [vmem:[#allocation2 + $0x38] sm:$0xff] %v538_v24   ;;  %588 = vst [vmem:[#allocation2 + $0x40] sm:$0xff] %v540_v25  }
  0x65   : > { %590 = vst [vmem:[#allocation2 + $0x48] sm:$0xff] %v542_v26   ;;  %592 = vst [vmem:[#allocation2 + $0x50] sm:$0xff] %v544_v27  }
  0x66   : > { %594 = vst [vmem:[#allocation2 + $0x58] sm:$0xff] %v546_v28   ;;  %596 = vst [vmem:[#allocation2 + $0x60] sm:$0xff] %v548_v29  }
  0x67   : > { %598 = vst [vmem:[#allocation2 + $0x68] sm:$0xff] %v550_v30   ;;  %600 = vst [vmem:[#allocation2 + $0x70] sm:$0xff] %v552_v31  }
  0x68   : > { %602 = vst [vmem:[#allocation2 + $0x78] sm:$0xff] %v554_v32   ;;  %604 = vst [vmem:[#allocation2 + $0x80] sm:$0xff] %v556_v33  }
  0x69   : > { %606 = vst [vmem:[#allocation2 + $0x88] sm:$0xff] %v558_v34   ;;  %608 = vst [vmem:[#allocation2 + $0x90] sm:$0xff] %v560_v35  }
  0x6a   : > { %610 = vst [vmem:[#allocation2 + $0x98] sm:$0xff] %v562_v36   ;;  %612 = vst [vmem:[#allocation2 + $0xa0] sm:$0xff] %v564_v37  }
  0x6b   : > { %614 = vst [vmem:[#allocation2 + $0xa8] sm:$0xff] %v566_v38   ;;  %616 = vst [vmem:[#allocation2 + $0xb0] sm:$0xff] %v568_v39  }
  0x6c   : > { %618 = vst [vmem:[#allocation2 + $0xb8] sm:$0xff] %v570_v40  }
  0x6d PF: > { %p670_p6 = pnand %p519_p2, %p516_p1 }
  0x6f   : > { %673 = sbr.rel (%p670_p6) target bundleno = 393 (0x189), region = 97 }
  0x74   : > { %v3727_v41 = vld [vmem:[%s4111_s21 + $0xa8] ss:$12 sps:$4 sm:$0xff]   ;;  %v3728_v42 = vld [vmem:[%s4111_s21 + $0x90] ss:$12 sps:$4 sm:$0xff]   ;;  %v3729_v43 = vld [vmem:[%s4111_s21 + $0x78] ss:$12 sps:$4 sm:$0xff]  }
  0x75   : > { %3434 = vmatprep.subr.bf16.mxu0 %v3727_v41  ;;  %3590 = vmatprep.subr.bf16.mxu1 %v3727_v41  ;;  %v3730_v44 = vld [vmem:[%s4111_s21 + $0x60] ss:$12 sps:$4 sm:$0xff]   ;;  %v3731_v47 = vld [vmem:[%s4111_s21 + $0x48] ss:$12 sps:$4 sm:$0xff]   ;;  %v3732_v48 = vld [vmem:[%s4111_s21 + $0x30] ss:$12 sps:$4 sm:$0xff]  }
  0x76   : > { %3435 = vmatpush3.bf16.msra.mxu0 %v3727_v41  ;;  %3598 = vmatpush3.bf16.msra.mxu1 %v3727_v41  ;;  %v3735_v45 = vld [vmem:[#allocation2] sm:$0xff]   ;;  %v3737_v51 = vld [vmem:[#allocation2 + $0x8] sm:$0xff]   ;;  %v3739_v53 = vld [vmem:[#allocation2 + $0x10] sm:$0xff]  }
  0x77   : > { %3436 = vmatprep.subr.bf16.mxu0 %v3728_v42  ;;  %3591 = vmatprep.subr.bf16.mxu1 %v3728_v42  ;;  %v3736_v46 = vld [vmem:[#allocation2 + $0x60] sm:$0xff]   ;;  %v3738_v52 = vld [vmem:[#allocation2 + $0x68] sm:$0xff]   ;;  %v3740_v54 = vld [vmem:[#allocation2 + $0x70] sm:$0xff]  }
  0x78   : > { %3450 = vmatprep.mubr.bf16.mxu0 %v3735_v45  ;;  %3474 = vmatprep.mubr.bf16.mxu1 %v3736_v46  ;;  %v3733_v49 = vld [vmem:[%s4111_s21 + $0x18] ss:$12 sps:$4 sm:$0xff]   ;;  %v3734_v50 = vld [vmem:[%s4111_s21] ss:$12 sps:$4 sm:$0xff]   ;;  %v3747_v61 = vld [vmem:[#allocation2 + $0x30] sm:$0xff]  }
  0x79   : > { %v3741_v55 = vld [vmem:[#allocation2 + $0x18] sm:$0xff]   ;;  %v3743_v57 = vld [vmem:[#allocation2 + $0x20] sm:$0xff]   ;;  %v3745_v59 = vld [vmem:[#allocation2 + $0x28] sm:$0xff]  }
  0x7a   : > { %3437 = vmatpush3.bf16.msra.mxu0 %v3728_v42  ;;  %3599 = vmatpush3.bf16.msra.mxu1 %v3728_v42  ;;  %v3742_v56 = vld [vmem:[#allocation2 + $0x78] sm:$0xff]   ;;  %v3744_v58 = vld [vmem:[#allocation2 + $0x80] sm:$0xff]   ;;  %v3746_v60 = vld [vmem:[#allocation2 + $0x88] sm:$0xff]  }
  0x7b   : > { %3438 = vmatprep.subr.bf16.mxu0 %v3729_v43  ;;  %3592 = vmatprep.subr.bf16.mxu1 %v3729_v43  ;;  %v3748_v62 = vld [vmem:[#allocation2 + $0x90] sm:$0xff]   ;;  %v3749_v63 = vld [vmem:[#allocation2 + $0x38] sm:$0xff]   ;;  %v3751_v1 = vld [vmem:[#allocation2 + $0x40] sm:$0xff]  }
  0x7c   : > { %v3750_v0 = vld [vmem:[#allocation2 + $0x98] sm:$0xff]   ;;  %v3752_v2 = vld [vmem:[#allocation2 + $0xa0] sm:$0xff]   ;;  %v3753_v3 = vld [vmem:[#allocation2 + $0x48] sm:$0xff]  }
  0x7d   : > { %v3754_v4 = vld [vmem:[#allocation2 + $0xa8] sm:$0xff]   ;;  %v3755_v5 = vld [vmem:[#allocation2 + $0x50] sm:$0xff]   ;;  %v3757_v7 = vld [vmem:[#allocation2 + $0x58] sm:$0xff]  }
  0x7e   : > { %3439 = vmatpush3.bf16.msra.mxu0 %v3729_v43  ;;  %3600 = vmatpush3.bf16.msra.mxu1 %v3729_v43  ;;  %v3756_v6 = vld [vmem:[#allocation2 + $0xb0] sm:$0xff]   ;;  %v3758_v8 = vld [vmem:[#allocation2 + $0xb8] sm:$0xff]   ;;  %v4266_v11 = vld [vmem:[%s4117_s20] ss:$0 sm:$0xff] }
  0x7f   : > { %3440 = vmatprep.subr.bf16.mxu0 %v3730_v44  ;;  %3593 = vmatprep.subr.bf16.mxu1 %v3730_v44 }
  0x82   : > { %3441 = vmatpush3.bf16.msra.mxu0 %v3730_v44  ;;  %3601 = vmatpush3.bf16.msra.mxu1 %v3730_v44 }
  0x83   : > { %3442 = vmatprep.subr.bf16.mxu0 %v3731_v47  ;;  %3594 = vmatprep.subr.bf16.mxu1 %v3731_v47 }
  0x86   : > { %3443 = vmatpush3.bf16.msra.mxu0 %v3731_v47  ;;  %3602 = vmatpush3.bf16.msra.mxu1 %v3731_v47 }
  0x87   : > { %3444 = vmatprep.subr.bf16.mxu0 %v3732_v48  ;;  %3595 = vmatprep.subr.bf16.mxu1 %v3732_v48 }
  0x8a   : > { %3445 = vmatpush3.bf16.msra.mxu0 %v3732_v48  ;;  %3603 = vmatpush3.bf16.msra.mxu1 %v3732_v48 }
  0x8b   : > { %3446 = vmatprep.subr.bf16.mxu0 %v3733_v49  ;;  %3596 = vmatprep.subr.bf16.mxu1 %v3733_v49 }
  0x8e   : > { %3447 = vmatpush3.bf16.msra.mxu0 %v3733_v49  ;;  %3604 = vmatpush3.bf16.msra.mxu1 %v3733_v49 }
  0x8f   : > { %3448 = vmatprep.subr.bf16.mxu0 %v3734_v50  ;;  %3597 = vmatprep.subr.bf16.mxu1 %v3734_v50 }
  0x92   : > { %3449 = vmatpush3.bf16.msra.mxu0 %v3734_v50  ;;  %3605 = vmatpush3.bf16.msra.mxu1 %v3734_v50 }
  0x95   : > { %3451 = vmatmul.mubr.bf16.vlgmr.msra.gmra.mxu0 %v3737_v51  ;;  %3475 = vmatmul.mubr.bf16.vlgmr.msra.gmra.mxu1 %v3738_v52 }
  0x96   : > { %3454 = vmatprep.mubr.bf16.mxu0 %v3739_v53  ;;  %3478 = vmatprep.mubr.bf16.mxu1 %v3740_v54 }
  0x9d   : > { %3455 = vmatmul.mubr.bf16.gmra.mxu0 %v3741_v55  ;;  %3479 = vmatmul.mubr.bf16.gmra.mxu1 %v3742_v56 }
  0x9e   : > { %3458 = vmatprep.mubr.bf16.mxu0 %v3743_v57  ;;  %3482 = vmatprep.mubr.bf16.mxu1 %v3744_v58 }
  0xa5   : > { %3459 = vmatmul.mubr.bf16.gmra.mxu0 %v3745_v59  ;;  %3483 = vmatmul.mubr.bf16.gmra.mxu1 %v3746_v60 }
  0xa6   : > { %3462 = vmatprep.mubr.bf16.mxu0 %v3747_v61  ;;  %3486 = vmatprep.mubr.bf16.mxu1 %v3748_v62 }
  0xad   : > { %3463 = vmatmul.mubr.bf16.gmra.mxu0 %v3749_v63  ;;  %3487 = vmatmul.mubr.bf16.gmra.mxu1 %v3750_v0 }
  0xae   : > { %3466 = vmatprep.mubr.bf16.mxu0 %v3751_v1  ;;  %3490 = vmatprep.mubr.bf16.mxu1 %v3752_v2 }
  0xb5   : > { %3467 = vmatmul.mubr.bf16.gmra.mxu0 %v3753_v3  ;;  %3491 = vmatmul.mubr.bf16.gmra.mxu1 %v3754_v4 }
  0xb6   : > { %3470 = vmatprep.mubr.bf16.mxu0 %v3755_v5  ;;  %3494 = vmatprep.mubr.bf16.mxu1 %v3756_v6 }
  0xbd   : > { %3471 = vmatmul.mubr.bf16.gmra.mxu0 %v3757_v7  ;;  %3495 = vmatmul.mubr.bf16.gmra.mxu1 %v3758_v8 }
 0x155   : > { %v3452_v9 = vpop.f32.mrf.mxu0  ;;  %v3476_v10 = vpop.f32.mrf.mxu1 }
 0x156   : > { %v980_v16 = vadd.f32 %v3452_v9, %v4266_v11  ;;  %v1076_v17 = vadd.f32 %v3476_v10, %v4266_v11 }
 0x157   : > { %v971_v12 = vpop.f32.mrf.mxu0  ;;  %v1067_v13 = vpop.f32.mrf.mxu1 }
 0x158   : > { %v972_v20 = vadd.f32 %v4266_v11, %v971_v12  ;;  %v1068_v21 = vadd.f32 %v4266_v11, %v1067_v13 }
 0x159   : > { %v3453_v14 = vpop.f32.mrf.mxu0  ;;  %v3477_v15 = vpop.f32.mrf.mxu1 }
 0x15a   : > { %v983_v18 = vadd.f32 %v3453_v14, %v4266_v11  ;;  %v1079_v19 = vadd.f32 %v3477_v15, %v4266_v11 }
 0x15b   : > { %v974_v22 = vpop.f32.mrf.mxu0  ;;  %v1070_v23 = vpop.f32.mrf.mxu1 }
 0x15c   : > { %v3130_v24 = vpack.c.bf16 %v983_v18, %v980_v16  ;;  %v3190_v25 = vpack.c.bf16 %v1079_v19, %v1076_v17  ;;  %v975_v26 = vadd.f32 %v4266_v11, %v974_v22  ;;  %v1071_v27 = vadd.f32 %v4266_v11, %v1070_v23 }
 0x15d   : > { %v3456_v28 = vpop.f32.mrf.mxu0  ;;  %v3480_v29 = vpop.f32.mrf.mxu1 }
 0x15e   : > { %3322 = vst [vmem:[#allocation3 + $0x8] sm:$0xff] %v3130_v24   ;;  %3334 = vst [vmem:[#allocation3 + $0x68] sm:$0xff] %v3190_v25   ;;  %v3125_v30 = vpack.c.bf16 %v975_v26, %v972_v20  ;;  %v3185_v31 = vpack.c.bf16 %v1071_v27, %v1068_v21  ;;  %v996_v36 = vadd.f32 %v3456_v28, %v4266_v11 }
 0x15f   : > { %v987_v32 = vpop.f32.mrf.mxu0  ;;  %v1083_v33 = vpop.f32.mrf.mxu1  ;;  %v1092_v37 = vadd.f32 %v3480_v29, %v4266_v11 }
 0x160   : > { %3126 = vst [vmem:[#allocation3] sm:$0xff] %v3125_v30   ;;  %3333 = vst [vmem:[#allocation3 + $0x60] sm:$0xff] %v3185_v31   ;;  %v988_v40 = vadd.f32 %v4266_v11, %v987_v32  ;;  %v1084_v41 = vadd.f32 %v4266_v11, %v1083_v33 }
 0x161   : > { %v3457_v34 = vpop.f32.mrf.mxu0  ;;  %v3481_v35 = vpop.f32.mrf.mxu1 }
 0x162   : > { %v999_v38 = vadd.f32 %v3457_v34, %v4266_v11  ;;  %v1095_v39 = vadd.f32 %v3481_v35, %v4266_v11 }
 0x163   : > { %v990_v42 = vpop.f32.mrf.mxu0  ;;  %v1086_v43 = vpop.f32.mrf.mxu1 }
 0x164   : > { %v3140_v44 = vpack.c.bf16 %v999_v38, %v996_v36  ;;  %v3200_v45 = vpack.c.bf16 %v1095_v39, %v1092_v37  ;;  %v991_v46 = vadd.f32 %v4266_v11, %v990_v42  ;;  %v1087_v47 = vadd.f32 %v4266_v11, %v1086_v43 }
 0x165   : > { %v3460_v48 = vpop.f32.mrf.mxu0  ;;  %v3484_v49 = vpop.f32.mrf.mxu1 }
 0x166   : > { %3324 = vst [vmem:[#allocation3 + $0x18] sm:$0xff] %v3140_v44   ;;  %3336 = vst [vmem:[#allocation3 + $0x78] sm:$0xff] %v3200_v45   ;;  %v3135_v50 = vpack.c.bf16 %v991_v46, %v988_v40  ;;  %v3195_v51 = vpack.c.bf16 %v1087_v47, %v1084_v41  ;;  %v1012_v56 = vadd.f32 %v3460_v48, %v4266_v11 }
 0x167   : > { %v1003_v52 = vpop.f32.mrf.mxu0  ;;  %v1099_v53 = vpop.f32.mrf.mxu1  ;;  %v1108_v57 = vadd.f32 %v3484_v49, %v4266_v11 }
 0x168   : > { %3323 = vst [vmem:[#allocation3 + $0x10] sm:$0xff] %v3135_v50   ;;  %3335 = vst [vmem:[#allocation3 + $0x70] sm:$0xff] %v3195_v51   ;;  %v1004_v60 = vadd.f32 %v4266_v11, %v1003_v52  ;;  %v1100_v61 = vadd.f32 %v4266_v11, %v1099_v53 }
 0x169   : > { %v3461_v54 = vpop.f32.mrf.mxu0  ;;  %v3485_v55 = vpop.f32.mrf.mxu1 }
 0x16a   : > { %v1015_v58 = vadd.f32 %v3461_v54, %v4266_v11  ;;  %v1111_v59 = vadd.f32 %v3485_v55, %v4266_v11 }
 0x16b   : > { %v1006_v62 = vpop.f32.mrf.mxu0  ;;  %v1102_v63 = vpop.f32.mrf.mxu1 }
 0x16c   : > { %v3150_v0 = vpack.c.bf16 %v1015_v58, %v1012_v56  ;;  %v3210_v1 = vpack.c.bf16 %v1111_v59, %v1108_v57  ;;  %v1007_v2 = vadd.f32 %v4266_v11, %v1006_v62  ;;  %v1103_v3 = vadd.f32 %v4266_v11, %v1102_v63 }
 0x16d   : > { %v3464_v4 = vpop.f32.mrf.mxu0  ;;  %v3488_v5 = vpop.f32.mrf.mxu1 }
 0x16e   : > { %3326 = vst [vmem:[#allocation3 + $0x28] sm:$0xff] %v3150_v0   ;;  %3338 = vst [vmem:[#allocation3 + $0x88] sm:$0xff] %v3210_v1   ;;  %v3145_v6 = vpack.c.bf16 %v1007_v2, %v1004_v60  ;;  %v3205_v7 = vpack.c.bf16 %v1103_v3, %v1100_v61  ;;  %v1028_v13 = vadd.f32 %v3464_v4, %v4266_v11 }
 0x16f   : > { %v1019_v8 = vpop.f32.mrf.mxu0  ;;  %v1115_v9 = vpop.f32.mrf.mxu1  ;;  %v1124_v14 = vadd.f32 %v3488_v5, %v4266_v11 }
 0x170   : > { %3325 = vst [vmem:[#allocation3 + $0x20] sm:$0xff] %v3145_v6   ;;  %3337 = vst [vmem:[#allocation3 + $0x80] sm:$0xff] %v3205_v7   ;;  %v1020_v17 = vadd.f32 %v4266_v11, %v1019_v8  ;;  %v1116_v18 = vadd.f32 %v4266_v11, %v1115_v9 }
 0x171   : > { %v3465_v10 = vpop.f32.mrf.mxu0  ;;  %v3489_v12 = vpop.f32.mrf.mxu1 }
 0x172   : > { %v1031_v15 = vadd.f32 %v3465_v10, %v4266_v11  ;;  %v1127_v16 = vadd.f32 %v3489_v12, %v4266_v11 }
 0x173   : > { %v1022_v19 = vpop.f32.mrf.mxu0  ;;  %v1118_v20 = vpop.f32.mrf.mxu1 }
 0x174   : > { %v3160_v21 = vpack.c.bf16 %v1031_v15, %v1028_v13  ;;  %v3220_v22 = vpack.c.bf16 %v1127_v16, %v1124_v14  ;;  %v1023_v23 = vadd.f32 %v4266_v11, %v1022_v19  ;;  %v1119_v24 = vadd.f32 %v4266_v11, %v1118_v20 }
 0x175   : > { %v3468_v25 = vpop.f32.mrf.mxu0  ;;  %v3492_v26 = vpop.f32.mrf.mxu1 }
 0x176   : > { %3328 = vst [vmem:[#allocation3 + $0x38] sm:$0xff] %v3160_v21   ;;  %3340 = vst [vmem:[#allocation3 + $0x98] sm:$0xff] %v3220_v22   ;;  %v3155_v27 = vpack.c.bf16 %v1023_v23, %v1020_v17  ;;  %v3215_v28 = vpack.c.bf16 %v1119_v24, %v1116_v18  ;;  %v1044_v33 = vadd.f32 %v3468_v25, %v4266_v11 }
 0x177   : > { %v1035_v29 = vpop.f32.mrf.mxu0  ;;  %v1131_v30 = vpop.f32.mrf.mxu1  ;;  %v1140_v34 = vadd.f32 %v3492_v26, %v4266_v11 }
 0x178   : > { %3327 = vst [vmem:[#allocation3 + $0x30] sm:$0xff] %v3155_v27   ;;  %3339 = vst [vmem:[#allocation3 + $0x90] sm:$0xff] %v3215_v28   ;;  %v1036_v37 = vadd.f32 %v4266_v11, %v1035_v29  ;;  %v1132_v38 = vadd.f32 %v4266_v11, %v1131_v30 }
 0x179   : > { %v3469_v31 = vpop.f32.mrf.mxu0  ;;  %v3493_v32 = vpop.f32.mrf.mxu1 }
 0x17a   : > { %v1047_v35 = vadd.f32 %v3469_v31, %v4266_v11  ;;  %v1143_v36 = vadd.f32 %v3493_v32, %v4266_v11 }
 0x17b   : > { %v1038_v39 = vpop.f32.mrf.mxu0  ;;  %v1134_v40 = vpop.f32.mrf.mxu1 }
 0x17c   : > { %v3170_v41 = vpack.c.bf16 %v1047_v35, %v1044_v33  ;;  %v3230_v42 = vpack.c.bf16 %v1143_v36, %v1140_v34  ;;  %v1039_v43 = vadd.f32 %v4266_v11, %v1038_v39  ;;  %v1135_v44 = vadd.f32 %v4266_v11, %v1134_v40 }
 0x17d   : > { %v3472_v45 = vpop.f32.mrf.mxu0  ;;  %v3496_v46 = vpop.f32.mrf.mxu1 }
 0x17e   : > { %3330 = vst [vmem:[#allocation3 + $0x48] sm:$0xff] %v3170_v41   ;;  %3342 = vst [vmem:[#allocation3 + $0xa8] sm:$0xff] %v3230_v42   ;;  %v3165_v47 = vpack.c.bf16 %v1039_v43, %v1036_v37  ;;  %v3225_v48 = vpack.c.bf16 %v1135_v44, %v1132_v38  ;;  %v1060_v53 = vadd.f32 %v3472_v45, %v4266_v11 }
 0x17f   : > { %v1051_v49 = vpop.f32.mrf.mxu0  ;;  %v1147_v50 = vpop.f32.mrf.mxu1  ;;  %v1156_v54 = vadd.f32 %v3496_v46, %v4266_v11 }
 0x180   : > { %3329 = vst [vmem:[#allocation3 + $0x40] sm:$0xff] %v3165_v47   ;;  %3341 = vst [vmem:[#allocation3 + $0xa0] sm:$0xff] %v3225_v48   ;;  %v1052_v57 = vadd.f32 %v4266_v11, %v1051_v49  ;;  %v1148_v58 = vadd.f32 %v4266_v11, %v1147_v50 }
 0x181   : > { %v3473_v51 = vpop.f32.mrf.mxu0  ;;  %v3497_v52 = vpop.f32.mrf.mxu1 }
 0x182   : > { %v1063_v55 = vadd.f32 %v3473_v51, %v4266_v11  ;;  %v1159_v56 = vadd.f32 %v3497_v52, %v4266_v11 }
 0x183   : > { %v1054_v59 = vpop.f32.mrf.mxu0  ;;  %v1150_v60 = vpop.f32.mrf.mxu1 }
 0x184   : > { %v3180_v61 = vpack.c.bf16 %v1063_v55, %v1060_v53  ;;  %v3240_v62 = vpack.c.bf16 %v1159_v56, %v1156_v54  ;;  %v1055_v63 = vadd.f32 %v4266_v11, %v1054_v59  ;;  %v1151_v0 = vadd.f32 %v4266_v11, %v1150_v60 }
 0x186   : > { %3332 = vst [vmem:[#allocation3 + $0x58] sm:$0xff] %v3180_v61   ;;  %3344 = vst [vmem:[#allocation3 + $0xb8] sm:$0xff] %v3240_v62   ;;  %v3175_v1 = vpack.c.bf16 %v1055_v63, %v1052_v57  ;;  %v3235_v2 = vpack.c.bf16 %v1151_v0, %v1148_v58 }
 0x188   : > { %3331 = vst [vmem:[#allocation3 + $0x50] sm:$0xff] %v3175_v1   ;;  %3343 = vst [vmem:[#allocation3 + $0xb0] sm:$0xff] %v3235_v2  }
 0x189 PF: > { %p2966_p7 = scmp.ne.s32.totalorder %s3915_s11, 0 }
 0x18b   : > { %1404 = sbr.rel (%p2966_p7) target bundleno = 409 (0x199), region = 101 }
 0x190   : > { %v3942_v3 = vmov 0.0  }
 0x191   : > { %1405 = vst [vmem:[#allocation5 + $0x30] sm:$0xff] %v3942_v3  ;;  %1406 = vst [vmem:[#allocation5] sm:$0xff] %v3942_v3 }
 0x192   : > { %1407 = vst [vmem:[#allocation5 + $0x58] sm:$0xff] %v3942_v3  ;;  %1408 = vst [vmem:[#allocation5 + $0x18] sm:$0xff] %v3942_v3 }
 0x193   : > { %1409 = vst [vmem:[#allocation5 + $0x50] sm:$0xff] %v3942_v3  ;;  %1410 = vst [vmem:[#allocation5 + $0x68] sm:$0xff] %v3942_v3 }
 0x194   : > { %1411 = vst [vmem:[#allocation5 + $0x8] sm:$0xff] %v3942_v3  ;;  %1412 = vst [vmem:[#allocation5 + $0x48] sm:$0xff] %v3942_v3 }
 0x195   : > { %1413 = vst [vmem:[#allocation5 + $0x40] sm:$0xff] %v3942_v3  ;;  %1414 = vst [vmem:[#allocation5 + $0x20] sm:$0xff] %v3942_v3 }
 0x196   : > { %1415 = vst [vmem:[#allocation5 + $0x10] sm:$0xff] %v3942_v3  ;;  %1416 = vst [vmem:[#allocation5 + $0x38] sm:$0xff] %v3942_v3 }
 0x197   : > { %1417 = vst [vmem:[#allocation5 + $0x60] sm:$0xff] %v3942_v3  ;;  %1418 = vst [vmem:[#allocation5 + $0x70] sm:$0xff] %v3942_v3 }
 0x198   : > { %1419 = vst [vmem:[#allocation5 + $0x78] sm:$0xff] %v3942_v3  ;;  %1420 = vst [vmem:[#allocation5 + $0x28] sm:$0xff] %v3942_v3 }
 0x199 PF: > { %s1453_s27 = sshra.s32 %s2884_s15, 3  ;;  %v4320_v11 = vld [vmem:[%s4131_s1] sm:$0xff]   ;;  %v4338_v14 = vld [vmem:[%s4131_s1 + $0x8] sm:$0xff]   ;;  %v4344_v16 = vld [vmem:[%s4131_s1 + $0x10] sm:$0xff]   ;;  %p2984_p8 = scmp.ne.s32.totalorder %s3923_s13, 0 }
 0x19a   : > { %v4323_v4 = vld [vmem:[%s4131_s1 + $0x20] sm:$0xff]   ;;  %s2967_s24 = sshll.u32 %s1453_s27, 2  ;;  %3514 = vmatprep.mubr.bf16.mxu0 %v4320_v11  ;;  %v4341_v15 = vld [vmem:[%s4131_s1 + $0x28] sm:$0xff]   ;;  %v4347_v17 = vld [vmem:[%s4131_s1 + $0x30] sm:$0xff]   ;;  %s4379_s15 = scalar_lea.vmem (!%p2984_p8), [#allocation4], %s4106_s23 }
 0x19b   : > { %s4325_s14 = scalar_lea.vmem [#allocation3], %s2967_s24  ;;  %3522 = vmatprep.mubr.bf16.mxu1 %v4323_v4  ;;  %v4354_v18 = vld [vmem:[%s4131_s1 + $0x18] sm:$0xff]   ;;  %v1439_v20 = vld [vmem:[#allocation5 + $0x58] sm:$0xff]  ;;  %v1437_v24 = vld [vmem:[#allocation5 + $0x30] sm:$0xff] }
 0x19c   : > { %v3759_v5 = vld [vmem:[%s4325_s14 + $0x38] sm:$0xff]   ;;  %v3760_v6 = vld [vmem:[%s4325_s14 + $0x30] sm:$0xff]   ;;  %v3761_v7 = vld [vmem:[%s4325_s14 + $0x28] sm:$0xff]  }
 0x19d   : > { %3498 = vmatprep.subr.bf16.mxu0 %v3759_v5  ;;  %3606 = vmatprep.subr.bf16.mxu1 %v3759_v5  ;;  %v3762_v8 = vld [vmem:[%s4325_s14 + $0x20] sm:$0xff]   ;;  %v3763_v9 = vld [vmem:[%s4325_s14 + $0x18] sm:$0xff]   ;;  %v3764_v10 = vld [vmem:[%s4325_s14 + $0x10] sm:$0xff]  }
 0x19e   : > { %3499 = vmatpush3.bf16.msra.mxu0 %v3759_v5  ;;  %3614 = vmatpush3.bf16.msra.mxu1 %v3759_v5  ;;  %v3765_v12 = vld [vmem:[%s4325_s14 + $0x8] sm:$0xff]   ;;  %v3766_v13 = vld [vmem:[%s4325_s14] sm:$0xff]   ;;  %v1447_v21 = vld [vmem:[#allocation5 + $0x10] sm:$0xff] }
 0x19f   : > { %3500 = vmatprep.subr.bf16.mxu0 %v3760_v6  ;;  %3607 = vmatprep.subr.bf16.mxu1 %v3760_v6  ;;  %v4357_v19 = vld [vmem:[%s4131_s1 + $0x38] sm:$0xff]   ;;  %v1440_v30 = vld [vmem:[#allocation5 + $0x18] sm:$0xff]  ;;  %v1443_v42 = vld [vmem:[#allocation5 + $0x8] sm:$0xff] }
 0x1a0   : > { %v1445_v25 = vld [vmem:[#allocation5 + $0x40] sm:$0xff]  ;;  %v1448_v31 = vld [vmem:[#allocation5 + $0x38] sm:$0xff]  ;;  %v1441_v48 = vld [vmem:[#allocation5 + $0x50] sm:$0xff] }
 0x1a1   : > { %v1438_v36 = vld [vmem:[#allocation5] sm:$0xff]  ;;  %v1451_v43 = vld [vmem:[#allocation5 + $0x78] sm:$0xff]  ;;  %v1444_v54 = vld [vmem:[#allocation5 + $0x48] sm:$0xff] }
 0x1a2   : > { %3501 = vmatpush3.bf16.msra.mxu0 %v3760_v6  ;;  %3615 = vmatpush3.bf16.msra.mxu1 %v3760_v6  ;;  %v1446_v37 = vld [vmem:[#allocation5 + $0x20] sm:$0xff]  ;;  %v1452_v55 = vld [vmem:[#allocation5 + $0x28] sm:$0xff]  ;;  %v1450_v61 = vld [vmem:[#allocation5 + $0x70] sm:$0xff] }
 0x1a3   : > { %3502 = vmatprep.subr.bf16.mxu0 %v3761_v7  ;;  %3608 = vmatprep.subr.bf16.mxu1 %v3761_v7  ;;  %v1449_v49 = vld [vmem:[#allocation5 + $0x60] sm:$0xff]  ;;  %v1442_v60 = vld [vmem:[#allocation5 + $0x68] sm:$0xff] }
 0x1a6   : > { %3503 = vmatpush3.bf16.msra.mxu0 %v3761_v7  ;;  %3616 = vmatpush3.bf16.msra.mxu1 %v3761_v7 }
 0x1a7   : > { %3504 = vmatprep.subr.bf16.mxu0 %v3762_v8  ;;  %3609 = vmatprep.subr.bf16.mxu1 %v3762_v8 }
 0x1aa   : > { %3505 = vmatpush3.bf16.msra.mxu0 %v3762_v8  ;;  %3617 = vmatpush3.bf16.msra.mxu1 %v3762_v8 }
 0x1ab   : > { %3506 = vmatprep.subr.bf16.mxu0 %v3763_v9  ;;  %3610 = vmatprep.subr.bf16.mxu1 %v3763_v9 }
 0x1ae   : > { %3507 = vmatpush3.bf16.msra.mxu0 %v3763_v9  ;;  %3618 = vmatpush3.bf16.msra.mxu1 %v3763_v9 }
 0x1af   : > { %3508 = vmatprep.subr.bf16.mxu0 %v3764_v10  ;;  %3611 = vmatprep.subr.bf16.mxu1 %v3764_v10 }
 0x1b2   : > { %3509 = vmatpush3.bf16.msra.mxu0 %v3764_v10  ;;  %3619 = vmatpush3.bf16.msra.mxu1 %v3764_v10 }
 0x1b3   : > { %3510 = vmatprep.subr.bf16.mxu0 %v3765_v12  ;;  %3612 = vmatprep.subr.bf16.mxu1 %v3765_v12 }
 0x1b6   : > { %3511 = vmatpush3.bf16.msra.mxu0 %v3765_v12  ;;  %3620 = vmatpush3.bf16.msra.mxu1 %v3765_v12 }
 0x1b7   : > { %3512 = vmatprep.subr.bf16.mxu0 %v3766_v13  ;;  %3613 = vmatprep.subr.bf16.mxu1 %v3766_v13 }
 0x1ba   : > { %3513 = vmatpush3.bf16.msra.mxu0 %v3766_v13  ;;  %3621 = vmatpush3.bf16.msra.mxu1 %v3766_v13 }
 0x1bd   : > { %3515 = vmatmul.mubr.bf16.vlgmr.msra.gmra.mxu0 %v4338_v14  ;;  %3523 = vmatmul.mubr.bf16.vlgmr.msra.gmra.mxu1 %v4341_v15 }
 0x1be   : > { %3518 = vmatprep.mubr.bf16.mxu0 %v4344_v16  ;;  %3526 = vmatprep.mubr.bf16.mxu1 %v4347_v17 }
 0x1c5   : > { %3519 = vmatmul.mubr.bf16.gmra.mxu0 %v4354_v18  ;;  %3527 = vmatmul.mubr.bf16.gmra.mxu1 %v4357_v19 }
 0x27d   : > { %v3516_v22 = vpop.f32.mrf.mxu0  ;;  %v3524_v23 = vpop.f32.mrf.mxu1 }
 0x27e   : > { %v1668_v26 = vadd.f32 %v3516_v22, %v1439_v20  ;;  %v1676_v27 = vadd.f32 %v3524_v23, %v1447_v21 }
 0x27f   : > { %v1603_v28 = vpop.f32.mrf.mxu0  ;;  %v1635_v29 = vpop.f32.mrf.mxu1 }
 0x280   : > { %1684 = vst [vmem:[#allocation5 + $0x58] sm:$0xff] %v1668_v26  ;;  %1692 = vst [vmem:[#allocation5 + $0x10] sm:$0xff] %v1676_v27  ;;  %v1666_v32 = vadd.f32 %v1603_v28, %v1437_v24  ;;  %v1674_v33 = vadd.f32 %v1635_v29, %v1445_v25 }
 0x281   : > { %v3517_v34 = vpop.f32.mrf.mxu0  ;;  %v3525_v35 = vpop.f32.mrf.mxu1 }
 0x282   : > { %1682 = vst [vmem:[#allocation5 + $0x30] sm:$0xff] %v1666_v32  ;;  %1690 = vst [vmem:[#allocation5 + $0x40] sm:$0xff] %v1674_v33  ;;  %v1669_v38 = vadd.f32 %v3517_v34, %v1440_v30  ;;  %v1677_v39 = vadd.f32 %v3525_v35, %v1448_v31 }
 0x283   : > { %v1606_v40 = vpop.f32.mrf.mxu0  ;;  %v1638_v41 = vpop.f32.mrf.mxu1 }
 0x284   : > { %1685 = vst [vmem:[#allocation5 + $0x18] sm:$0xff] %v1669_v38  ;;  %1693 = vst [vmem:[#allocation5 + $0x38] sm:$0xff] %v1677_v39  ;;  %v1667_v44 = vadd.f32 %v1606_v40, %v1438_v36  ;;  %v1675_v45 = vadd.f32 %v1638_v41, %v1446_v37 }
 0x285   : > { %v3520_v46 = vpop.f32.mrf.mxu0  ;;  %v3528_v47 = vpop.f32.mrf.mxu1 }
 0x286   : > { %1683 = vst [vmem:[#allocation5] sm:$0xff] %v1667_v44  ;;  %1691 = vst [vmem:[#allocation5 + $0x20] sm:$0xff] %v1675_v45  ;;  %v1672_v50 = vadd.f32 %v3520_v46, %v1443_v42  ;;  %v1680_v51 = vadd.f32 %v3528_v47, %v1451_v43 }
 0x287   : > { %v1619_v52 = vpop.f32.mrf.mxu0  ;;  %v1651_v53 = vpop.f32.mrf.mxu1 }
 0x288   : > { %1688 = vst [vmem:[#allocation5 + $0x8] sm:$0xff] %v1672_v50  ;;  %1696 = vst [vmem:[#allocation5 + $0x78] sm:$0xff] %v1680_v51  ;;  %v1670_v56 = vadd.f32 %v1619_v52, %v1441_v48  ;;  %v1678_v57 = vadd.f32 %v1651_v53, %v1449_v49 }
 0x289   : > { %v3521_v58 = vpop.f32.mrf.mxu0  ;;  %v3529_v59 = vpop.f32.mrf.mxu1 }
 0x28a   : > { %1686 = vst [vmem:[#allocation5 + $0x50] sm:$0xff] %v1670_v56  ;;  %1694 = vst [vmem:[#allocation5 + $0x60] sm:$0xff] %v1678_v57  ;;  %v1673_v62 = vadd.f32 %v3521_v58, %v1444_v54  ;;  %v1681_v63 = vadd.f32 %v3529_v59, %v1452_v55  ;;  %1700 = sbr.rel (%p2984_p8) target bundleno = 826 (0x33a), region = 105 }
 0x28b   : > { %v1622_v0 = vpop.f32.mrf.mxu0  ;;  %v1654_v1 = vpop.f32.mrf.mxu1 }
 0x28c   : > { %1689 = vst [vmem:[#allocation5 + $0x48] sm:$0xff] %v1673_v62  ;;  %1697 = vst [vmem:[#allocation5 + $0x28] sm:$0xff] %v1681_v63  ;;  %v1671_v2 = vadd.f32 %v1622_v0, %v1442_v60  ;;  %v1679_v3 = vadd.f32 %v1654_v1, %v1450_v61 }
 0x28e   : > { %1687 = vst [vmem:[#allocation5 + $0x68] sm:$0xff] %v1671_v2  ;;  %1695 = vst [vmem:[#allocation5 + $0x70] sm:$0xff] %v1679_v3 }
 0x28f   : > { %v1720_v5 = vunpack.c.l.bf16 %v4338_v14  ;;  %v1718_v6 = vunpack.c.l.bf16 %v4320_v11  ;;  %v1721_v7 = vunpack.c.h.bf16 %v4338_v14  ;;  %v1719_v8 = vunpack.c.h.bf16 %v4320_v11  ;;  %v1705_v26 = vld [vmem:[%s4379_s15 + $0x18] sm:$0xff]  ;;  %v1703_v27 = vld [vmem:[%s4379_s15 + $0x8] sm:$0xff]  ;;  %v1706_v33 = vld [vmem:[%s4379_s15 + $0x20] sm:$0xff] }
 0x290   : > { %v1723_v9 = vunpack.c.h.bf16 %v4344_v16  ;;  %v1722_v10 = vunpack.c.l.bf16 %v4344_v16  ;;  %v1725_v12 = vunpack.c.h.bf16 %v4354_v18  ;;  %v1724_v13 = vunpack.c.l.bf16 %v4354_v18  ;;  %v1707_v32 = vld [vmem:[%s4379_s15 + $0x28] sm:$0xff]  ;;  %v1709_v38 = vld [vmem:[%s4379_s15 + $0x38] sm:$0xff]  ;;  %v1708_v39 = vld [vmem:[%s4379_s15 + $0x30] sm:$0xff] }
 0x291   : > { %1738 = vadd.xlane.f32.xlu1 %v1720_v5  ;;  %1734 = vadd.xlane.f32.xlu0 %v1718_v6  ;;  %v1727_v20 = vunpack.c.h.bf16 %v4323_v4  ;;  %v1726_v14 = vunpack.c.l.bf16 %v4323_v4  ;;  %v1729_v11 = vunpack.c.h.bf16 %v4341_v15  ;;  %v1728_v21 = vunpack.c.l.bf16 %v4341_v15  ;;  %v1704_v4 = vld [vmem:[%s4379_s15 + $0x10] sm:$0xff]  ;;  %v1702_v15 = vld [vmem:[%s4379_s15] sm:$0xff]  ;;  %v1711_v44 = vld [vmem:[%s4379_s15 + $0x48] sm:$0xff] }
 0x292   : > { %v1731_v16 = vunpack.c.h.bf16 %v4347_v17  ;;  %v1730_v22 = vunpack.c.l.bf16 %v4347_v17  ;;  %v1733_v18 = vunpack.c.h.bf16 %v4357_v19  ;;  %v1732_v23 = vunpack.c.l.bf16 %v4357_v19  ;;  %v1710_v45 = vld [vmem:[%s4379_s15 + $0x40] sm:$0xff]  ;;  %v1713_v50 = vld [vmem:[%s4379_s15 + $0x58] sm:$0xff]  ;;  %v1712_v51 = vld [vmem:[%s4379_s15 + $0x50] sm:$0xff] }
 0x293   : > { %vm1782_vm1 = vcmask 7168   ;;  %v1715_v56 = vld [vmem:[%s4379_s15 + $0x68] sm:$0xff]  ;;  %v1714_v57 = vld [vmem:[%s4379_s15 + $0x60] sm:$0xff]  ;;  %v1717_v62 = vld [vmem:[%s4379_s15 + $0x78] sm:$0xff] }
 0x294   : > { %v1716_v63 = vld [vmem:[%s4379_s15 + $0x70] sm:$0xff] }
 0x295   : > { %1740 = vadd.xlane.f32.xlu1 %v1721_v7  ;;  %1736 = vadd.xlane.f32.xlu0 %v1719_v8 }
 0x299   : > { %1744 = vadd.xlane.f32.xlu1 %v1723_v9  ;;  %1742 = vadd.xlane.f32.xlu0 %v1722_v10 }
 0x29d   : > { %1748 = vadd.xlane.f32.xlu1 %v1725_v12  ;;  %1746 = vadd.xlane.f32.xlu0 %v1724_v13 }
 0x2a1   : > { %1752 = vadd.xlane.f32.xlu1 %v1727_v20  ;;  %1750 = vadd.xlane.f32.xlu0 %v1726_v14 }
 0x2a5   : > { %1756 = vadd.xlane.f32.xlu1 %v1729_v11  ;;  %1754 = vadd.xlane.f32.xlu0 %v1728_v21 }
 0x2a9   : > { %1760 = vadd.xlane.f32.xlu1 %v1731_v16  ;;  %1758 = vadd.xlane.f32.xlu0 %v1730_v22 }
 0x2ad   : > { %1764 = vadd.xlane.f32.xlu1 %v1733_v18  ;;  %1762 = vadd.xlane.f32.xlu0 %v1732_v23 }
 0x31a   : > { %v1739_v17 = vpop.xlane.xlu1 %1738  ;;  %v1735_v24 = vpop.xlane.xlu0 %1734 }
 0x31b   : > { %v1768_v19 = vadd.f32 %v1739_v17, %v1704_v4  ;;  %v1766_v25 = vadd.f32 %v1735_v24, %v1702_v15 }
 0x31d   : > { %1785 = vst.msk [vmem:[%s4379_s15 + $0x10] sm:$0xff] %vm1782_vm1, %v1768_v19  ;;  %1783 = vst.msk [vmem:[%s4379_s15] sm:$0xff] %vm1782_vm1, %v1766_v25 }
 0x31e   : > { %v1741_v28 = vpop.xlane.xlu1 %1740  ;;  %v1737_v29 = vpop.xlane.xlu0 %1736 }
 0x31f   : > { %v1769_v30 = vadd.f32 %v1741_v28, %v1705_v26  ;;  %v1767_v31 = vadd.f32 %v1737_v29, %v1703_v27 }
 0x321   : > { %1786 = vst.msk [vmem:[%s4379_s15 + $0x18] sm:$0xff] %vm1782_vm1, %v1769_v30  ;;  %1784 = vst.msk [vmem:[%s4379_s15 + $0x8] sm:$0xff] %vm1782_vm1, %v1767_v31 }
 0x322   : > { %v1745_v34 = vpop.xlane.xlu1 %1744  ;;  %v1743_v35 = vpop.xlane.xlu0 %1742 }
 0x323   : > { %v1771_v36 = vadd.f32 %v1745_v34, %v1707_v32  ;;  %v1770_v37 = vadd.f32 %v1743_v35, %v1706_v33 }
 0x325   : > { %1788 = vst.msk [vmem:[%s4379_s15 + $0x28] sm:$0xff] %vm1782_vm1, %v1771_v36  ;;  %1787 = vst.msk [vmem:[%s4379_s15 + $0x20] sm:$0xff] %vm1782_vm1, %v1770_v37 }
 0x326   : > { %v1749_v40 = vpop.xlane.xlu1 %1748  ;;  %v1747_v41 = vpop.xlane.xlu0 %1746 }
 0x327   : > { %v1773_v42 = vadd.f32 %v1749_v40, %v1709_v38  ;;  %v1772_v43 = vadd.f32 %v1747_v41, %v1708_v39 }
 0x329   : > { %1790 = vst.msk [vmem:[%s4379_s15 + $0x38] sm:$0xff] %vm1782_vm1, %v1773_v42  ;;  %1789 = vst.msk [vmem:[%s4379_s15 + $0x30] sm:$0xff] %vm1782_vm1, %v1772_v43 }
 0x32a   : > { %v1753_v46 = vpop.xlane.xlu1 %1752  ;;  %v1751_v47 = vpop.xlane.xlu0 %1750 }
 0x32b   : > { %v1775_v48 = vadd.f32 %v1753_v46, %v1711_v44  ;;  %v1774_v49 = vadd.f32 %v1751_v47, %v1710_v45 }
 0x32d   : > { %1792 = vst.msk [vmem:[%s4379_s15 + $0x48] sm:$0xff] %vm1782_vm1, %v1775_v48  ;;  %1791 = vst.msk [vmem:[%s4379_s15 + $0x40] sm:$0xff] %vm1782_vm1, %v1774_v49 }
 0x32e   : > { %v1757_v52 = vpop.xlane.xlu1 %1756  ;;  %v1755_v53 = vpop.xlane.xlu0 %1754 }
 0x32f   : > { %v1777_v54 = vadd.f32 %v1757_v52, %v1713_v50  ;;  %v1776_v55 = vadd.f32 %v1755_v53, %v1712_v51 }
 0x331   : > { %1794 = vst.msk [vmem:[%s4379_s15 + $0x58] sm:$0xff] %vm1782_vm1, %v1777_v54  ;;  %1793 = vst.msk [vmem:[%s4379_s15 + $0x50] sm:$0xff] %vm1782_vm1, %v1776_v55 }
 0x332   : > { %v1761_v58 = vpop.xlane.xlu1 %1760  ;;  %v1759_v59 = vpop.xlane.xlu0 %1758 }
 0x333   : > { %v1779_v60 = vadd.f32 %v1761_v58, %v1715_v56  ;;  %v1778_v61 = vadd.f32 %v1759_v59, %v1714_v57 }
 0x335   : > { %1796 = vst.msk [vmem:[%s4379_s15 + $0x68] sm:$0xff] %vm1782_vm1, %v1779_v60  ;;  %1795 = vst.msk [vmem:[%s4379_s15 + $0x60] sm:$0xff] %vm1782_vm1, %v1778_v61 }
 0x336   : > { %v1765_v0 = vpop.xlane.xlu1 %1764  ;;  %v1763_v1 = vpop.xlane.xlu0 %1762 }
 0x337   : > { %v1781_v2 = vadd.f32 %v1765_v0, %v1717_v62  ;;  %v1780_v3 = vadd.f32 %v1763_v1, %v1716_v63 }
 0x339   : > { %1798 = vst.msk [vmem:[%s4379_s15 + $0x78] sm:$0xff] %vm1782_vm1, %v1781_v2  ;;  %1797 = vst.msk [vmem:[%s4379_s15 + $0x70] sm:$0xff] %vm1782_vm1, %v1780_v3 }
 0x33a PF: > { %p1799_p9 = scmp.eq.s32.totalorder %s3915_s11, 2  ;;  %p2985_p10 = scmp.ne.s32.totalorder %s3915_s11, 2 }
 0x33b   : > { %s1803_s1 = sshra.s32 (!%p2985_p10), %s4106_s23, 3  ;;  %s4450_s19 = scalar_lea.vmem (!%p2985_p10), [#allocation4], %s4106_s23 }
 0x33c   : > { %1802 = sbr.rel (%p2985_p10) target bundleno = 1102 (0x44e), region = 109  ;;  %s2986_s26 = sshll.u32 (!%p2985_p10), %s1803_s1, 2 }
 0x33d   : > { %s4443_s22 = scalar_lea.vmem (!%p2985_p10), [#allocation2], %s2986_s26 }
 0x341   : > { %v3785_v5 = vld [vmem:[%s4111_s21 + $0xb0] ss:$12 sps:$4 sm:$0xff]   ;;  %v3787_v6 = vld [vmem:[%s4111_s21 + $0xac] ss:$12 sps:$4 sm:$0xff]   ;;  %v3943_v7 = vmov 0   ;;  %v2093_v18 = vld [vmem:[%s4450_s19] sm:$0xff]  ;;  %v1841_v48 = vlaneseq }
 0x342   : > { %2011 = vmatprep.mubr.bf16.mxu0 %v3943_v7  ;;  %2051 = vmatprep.mubr.bf16.mxu1 %v3943_v7  ;;  %v3788_v8 = vld [vmem:[%s4111_s21 + $0x98] ss:$12 sps:$4 sm:$0xff]   ;;  %v3790_v9 = vld [vmem:[%s4111_s21 + $0x94] ss:$12 sps:$4 sm:$0xff]   ;;  %v3793_v12 = vld [vmem:[%s4111_s21 + $0x7c] ss:$12 sps:$4 sm:$0xff]  }
 0x343   : > { %1979 = vmatprep.subr.bf16.mxu0 %v3785_v5  ;;  %3622 = vmatprep.subr.bf16.mxu1 %v3785_v5  ;;  %v3791_v10 = vld [vmem:[%s4111_s21 + $0x80] ss:$12 sps:$4 sm:$0xff]   ;;  %v3794_v13 = vld [vmem:[%s4111_s21 + $0x68] ss:$12 sps:$4 sm:$0xff]   ;;  %v3796_v20 = vld [vmem:[%s4111_s21 + $0x64] ss:$12 sps:$4 sm:$0xff]  }
 0x344   : > { %1980 = vmatpush1.bf16.msra.mxu0 %v3787_v6  ;;  %3630 = vmatpush1.bf16.msra.mxu1 %v3787_v6  ;;  %v3797_v14 = vld [vmem:[%s4111_s21 + $0x50] ss:$12 sps:$4 sm:$0xff]   ;;  %v3799_v11 = vld [vmem:[%s4111_s21 + $0x4c] ss:$12 sps:$4 sm:$0xff]   ;;  %v3802_v22 = vld [vmem:[%s4111_s21 + $0x34] ss:$12 sps:$4 sm:$0xff]  }
 0x345   : > { %1981 = vmatprep.subr.bf16.mxu0 %v3788_v8  ;;  %3623 = vmatprep.subr.bf16.mxu1 %v3788_v8  ;;  %v3800_v21 = vld [vmem:[%s4111_s21 + $0x38] ss:$12 sps:$4 sm:$0xff]   ;;  %v2095_v16 = vld [vmem:[%s4450_s19 + $0x10] sm:$0xff]  ;;  %v3803_v23 = vld [vmem:[%s4111_s21 + $0x20] ss:$12 sps:$4 sm:$0xff]   ;;  %v1842_v51 = vshrl.u32 %v1841_v48, 7 }
 0x346   : > { %3784 = vset.pattern.permute.xlu1 %v3943_v7  ;;  %3783 = vset.pattern.permute.xlu0 %v3943_v7  ;;  %v2096_v4 = vld [vmem:[%s4450_s19 + $0x18] sm:$0xff]  ;;  %v2094_v15 = vld [vmem:[%s4450_s19 + $0x8] sm:$0xff]  ;;  %v2097_v25 = vld [vmem:[%s4450_s19 + $0x20] sm:$0xff] }
 0x347   : > { %2137 = vperm.xlu1 %3784, %v2095_v16   ;;  %2127 = vperm.xlu0 %3783, %v2093_v18   ;;  %v3805_v17 = vld [vmem:[%s4111_s21 + $0x1c] ss:$12 sps:$4 sm:$0xff]   ;;  %v3808_v26 = vld [vmem:[%s4111_s21 + $0x4] ss:$12 sps:$4 sm:$0xff]   ;;  %v1843_v53 = vsub.s32 0, %v1842_v51  ;;  %v1847_v57 = vsub.s32 1, %v1842_v51 }
 0x348   : > { %1982 = vmatpush1.bf16.msra.mxu0 %v3790_v9  ;;  %3631 = vmatpush1.bf16.msra.mxu1 %v3790_v9  ;;  %v3806_v24 = vld [vmem:[%s4111_s21 + $0x8] ss:$12 sps:$4 sm:$0xff]   ;;  %v3809_v27 = vld [vmem:[%s4443_s22] sm:$0xff]   ;;  %v2100_v29 = vld [vmem:[%s4450_s19 + $0x38] sm:$0xff] }
 0x349   : > { %1983 = vmatprep.subr.bf16.mxu0 %v3791_v10  ;;  %3624 = vmatprep.subr.bf16.mxu1 %v3791_v10  ;;  %v2098_v19 = vld [vmem:[%s4450_s19 + $0x28] sm:$0xff]  ;;  %v3810_v28 = vld [vmem:[%s4443_s22 + $0x20] sm:$0xff]   ;;  %v2099_v30 = vld [vmem:[%s4450_s19 + $0x30] sm:$0xff] }
 0x34a   : > { %v2102_v31 = vld [vmem:[%s4450_s19 + $0x48] sm:$0xff]  ;;  %v2101_v32 = vld [vmem:[%s4450_s19 + $0x40] sm:$0xff]  ;;  %v2104_v35 = vld [vmem:[%s4450_s19 + $0x58] sm:$0xff] }
 0x34b   : > { %2142 = vperm.xlu1 %3784, %v2096_v4   ;;  %2132 = vperm.xlu0 %3783, %v2094_v15   ;;  %v3811_v33 = vld [vmem:[%s4443_s22 + $0x8] sm:$0xff]   ;;  %v2103_v36 = vld [vmem:[%s4450_s19 + $0x50] sm:$0xff]  ;;  %v2105_v38 = vld [vmem:[%s4450_s19 + $0x60] sm:$0xff] }
 0x34c   : > { %1984 = vmatpush1.bf16.msra.mxu0 %v3793_v12  ;;  %3632 = vmatpush1.bf16.msra.mxu1 %v3793_v12  ;;  %v3812_v34 = vld [vmem:[%s4443_s22 + $0x28] sm:$0xff]   ;;  %v3813_v39 = vld [vmem:[%s4443_s22 + $0x10] sm:$0xff]   ;;  %v2108_v41 = vld [vmem:[%s4450_s19 + $0x78] sm:$0xff] }
 0x34d   : > { %1985 = vmatprep.subr.bf16.mxu0 %v3794_v13  ;;  %3625 = vmatprep.subr.bf16.mxu1 %v3794_v13  ;;  %v2106_v37 = vld [vmem:[%s4450_s19 + $0x68] sm:$0xff]  ;;  %v3814_v40 = vld [vmem:[%s4443_s22 + $0x30] sm:$0xff]   ;;  %v3815_v43 = vld [vmem:[%s4443_s22 + $0x18] sm:$0xff]  }
 0x34e   : > { %v2107_v42 = vld [vmem:[%s4450_s19 + $0x70] sm:$0xff]  ;;  %v3816_v44 = vld [vmem:[%s4443_s22 + $0x38] sm:$0xff]   ;;  %v1839_v54 = vld [vmem:[%s4117_s20 + $0x1] sm:$0x3] }
 0x34f   : > { %2152 = vperm.xlu1 %3784, %v2098_v19   ;;  %2147 = vperm.xlu0 %3783, %v2097_v25   ;;  %v4496_v56 = vrot.slane %v1839_v54, %v1843_v53  ;;  %v4502_v0 = vrot.slane %v1839_v54, %v1847_v57  ;;  %v2109_v2 = vld [vmem:[#allocation5 + $0x30] sm:$0xff]  ;;  %v2117_v5 = vld [vmem:[#allocation5 + $0x40] sm:$0xff] }
 0x350   : > { %1986 = vmatpush1.bf16.msra.mxu0 %v3796_v20  ;;  %3633 = vmatpush1.bf16.msra.mxu1 %v3796_v20 }
 0x351   : > { %1987 = vmatprep.subr.bf16.mxu0 %v3797_v14  ;;  %3626 = vmatprep.subr.bf16.mxu1 %v3797_v14 }
 0x353   : > { %2162 = vperm.xlu1 %3784, %v2100_v29   ;;  %2157 = vperm.xlu0 %3783, %v2099_v30  }
 0x354   : > { %1988 = vmatpush1.bf16.msra.mxu0 %v3799_v11  ;;  %3634 = vmatpush1.bf16.msra.mxu1 %v3799_v11 }
 0x355   : > { %1989 = vmatprep.subr.bf16.mxu0 %v3800_v21  ;;  %3627 = vmatprep.subr.bf16.mxu1 %v3800_v21 }
 0x357   : > { %2172 = vperm.xlu1 %3784, %v2102_v31   ;;  %2167 = vperm.xlu0 %3783, %v2101_v32  }
 0x358   : > { %1990 = vmatpush1.bf16.msra.mxu0 %v3802_v22  ;;  %3635 = vmatpush1.bf16.msra.mxu1 %v3802_v22  ;;  %v2110_v22 = vld [vmem:[#allocation5] sm:$0xff] }
 0x359   : > { %1991 = vmatprep.subr.bf16.mxu0 %v3803_v23  ;;  %3628 = vmatprep.subr.bf16.mxu1 %v3803_v23  ;;  %v2118_v23 = vld [vmem:[#allocation5 + $0x20] sm:$0xff] }
 0x35b   : > { %2182 = vperm.xlu1 %3784, %v2104_v35   ;;  %2177 = vperm.xlu0 %3783, %v2103_v36  }
 0x35c   : > { %1992 = vmatpush1.bf16.msra.mxu0 %v3805_v17  ;;  %3636 = vmatpush1.bf16.msra.mxu1 %v3805_v17 }
 0x35d   : > { %1993 = vmatprep.subr.bf16.mxu0 %v3806_v24  ;;  %3629 = vmatprep.subr.bf16.mxu1 %v3806_v24 }
 0x35f   : > { %2192 = vperm.xlu1 %3784, %v2106_v37   ;;  %2187 = vperm.xlu0 %3783, %v2105_v38   ;;  %v2111_v37 = vld [vmem:[#allocation5 + $0x58] sm:$0xff]  ;;  %v2119_v38 = vld [vmem:[#allocation5 + $0x10] sm:$0xff] }
 0x360   : > { %1994 = vmatpush1.bf16.msra.mxu0 %v3808_v26  ;;  %3637 = vmatpush1.bf16.msra.mxu1 %v3808_v26 }
 0x363   : > { %2012 = vmatmul.mubr.bf16.vlgmr.msra.gmra.mxu0 %v3809_v27  ;;  %2052 = vmatmul.mubr.bf16.vlgmr.msra.gmra.mxu1 %v3810_v28 }
 0x364   : > { %2021 = vmatprep.mubr.bf16.mxu0 %v3943_v7  ;;  %2061 = vmatprep.mubr.bf16.mxu1 %v3943_v7 }
 0x365   : > { %2202 = vperm.xlu1 %3784, %v2108_v41   ;;  %2197 = vperm.xlu0 %3783, %v2107_v42  }
 0x36b   : > { %2022 = vmatmul.mubr.bf16.gmra.mxu0 %v3811_v33  ;;  %2062 = vmatmul.mubr.bf16.gmra.mxu1 %v3812_v34 }
 0x36c   : > { %2031 = vmatprep.mubr.bf16.mxu0 %v3943_v7  ;;  %2071 = vmatprep.mubr.bf16.mxu1 %v3943_v7 }
 0x373   : > { %2032 = vmatmul.mubr.bf16.gmra.mxu0 %v3813_v39  ;;  %2072 = vmatmul.mubr.bf16.gmra.mxu1 %v3814_v40 }
 0x374   : > { %2041 = vmatprep.mubr.bf16.mxu0 %v3943_v7  ;;  %2081 = vmatprep.mubr.bf16.mxu1 %v3943_v7 }
 0x37b   : > { %2042 = vmatmul.mubr.bf16.gmra.mxu0 %v3815_v43  ;;  %2082 = vmatmul.mubr.bf16.gmra.mxu1 %v3816_v44 }
 0x3c2   : > { %v2128_v45 = vpop.permute.xlu0 %2127  ;;  %v2138_v46 = vpop.permute.xlu1 %2137 }
 0x3c6   : > { %v2133_v47 = vpop.permute.xlu0 %2132  ;;  %v4487_v49 = vpop.permute.xlu1 %2142 }
 0x3ca   : > { %v4489_v50 = vpop.permute.xlu0 %2147  ;;  %v4491_v52 = vpop.permute.xlu1 %2152 }
 0x3ce   : > { %v4494_v55 = vpop.permute.xlu0 %2157  ;;  %v4498_v58 = vpop.permute.xlu1 %2162 }
 0x3d2   : > { %v2168_v61 = vpop.permute.xlu0 %2167  ;;  %v2173_v10 = vpop.permute.xlu1 %2172 }
 0x3d6   : > { %v2178_v34 = vpop.permute.xlu0 %2177 }
 0x423   : > { %v2013_v59 = vpop.f32.mrf.mxu0  ;;  %v2053_v60 = vpop.f32.mrf.mxu1 }
 0x424   : > { %v2014_v62 = vadd.f32 %v2013_v59, %v4496_v56  ;;  %v2054_v63 = vadd.f32 %v2053_v60, %v4496_v56 }
 0x425   : > { %v2015_v1 = vpop.f32.mrf.mxu0  ;;  %v2055_v3 = vpop.f32.mrf.mxu1 }
 0x426   : > { %v2205_v6 = vmul.f32 %v2128_v45, %v2014_v62  ;;  %v2213_v7 = vmul.f32 %v2168_v61, %v2054_v63  ;;  %v2016_v11 = vadd.f32 %v2015_v1, %v4502_v0  ;;  %v2056_v21 = vadd.f32 %v2055_v3, %v4502_v0  ;;  %v2183_v45 = vpop.permute.xlu1 %2182  ;;  %v2120_v63 = vld [vmem:[#allocation5 + $0x38] sm:$0xff] }
 0x427   : > { %v2017_v8 = vpop.f32.mrf.mxu0  ;;  %v2057_v9 = vpop.f32.mrf.mxu1 }
 0x428   : > { %v2221_v12 = vsub.f32 %v2109_v2, %v2205_v6  ;;  %v2229_v13 = vsub.f32 %v2117_v5, %v2213_v7  ;;  %v2018_v20 = vadd.f32 %v2017_v8, %v4496_v56  ;;  %v2058_v14 = vadd.f32 %v2057_v9, %v4496_v56 }
 0x429   : > { %v2019_v16 = vpop.f32.mrf.mxu0  ;;  %v2059_v18 = vpop.f32.mrf.mxu1 }
 0x42a   : > { %v2206_v4 = vmul.f32 %v2133_v47, %v2018_v20  ;;  %v2214_v15 = vmul.f32 %v2173_v10, %v2058_v14  ;;  %v2237_v17 = vadd.f32 %v2221_v12, %v2016_v11  ;;  %v2245_v24 = vadd.f32 %v2229_v13, %v2056_v21  ;;  %v2188_v13 = vpop.permute.xlu0 %2187 }
 0x42b   : > { %v2023_v19 = vpop.f32.mrf.mxu0  ;;  %v2063_v25 = vpop.f32.mrf.mxu1  ;;  %v2020_v26 = vadd.f32 %v2019_v16, %v4502_v0  ;;  %v2060_v28 = vadd.f32 %v2059_v18, %v4502_v0  ;;  %v2113_v16 = vld [vmem:[#allocation5 + $0x50] sm:$0xff]  ;;  %v2121_v18 = vld [vmem:[#allocation5 + $0x60] sm:$0xff] }
 0x42c   : > { %v2222_v27 = vsub.f32 %v2110_v22, %v2206_v4  ;;  %v2230_v29 = vsub.f32 %v2118_v23, %v2214_v15  ;;  %v2024_v30 = vadd.f32 %v2023_v19, %v4496_v56  ;;  %v2064_v31 = vadd.f32 %v2063_v25, %v4496_v56 }
 0x42d   : > { %v2025_v32 = vpop.f32.mrf.mxu0  ;;  %v2065_v33 = vpop.f32.mrf.mxu1  ;;  %v2253_v39 = vmax.f32 %v2237_v17, 0.0  ;;  %v2261_v40 = vmax.f32 %v2245_v24, 0.0 }
 0x42e   : > { %v2238_v35 = vadd.f32 %v2222_v27, %v2020_v26  ;;  %v2246_v36 = vadd.f32 %v2230_v29, %v2060_v28  ;;  %v2207_v41 = vmul.f32 %v2138_v46, %v2024_v30  ;;  %v2215_v42 = vmul.f32 %v2178_v34, %v2064_v31  ;;  %v2112_v46 = vld [vmem:[#allocation5 + $0x18] sm:$0xff] }
 0x42f   : > { %v2027_v43 = vpop.f32.mrf.mxu0  ;;  %v2067_v44 = vpop.f32.mrf.mxu1  ;;  %v2026_v54 = vadd.f32 %v2025_v32, %v4502_v0  ;;  %v2066_v59 = vadd.f32 %v2065_v33, %v4502_v0 }
 0x430   : > { %v2254_v47 = vmax.f32 %v2238_v35, 0.0  ;;  %v2262_v48 = vmax.f32 %v2246_v36, 0.0  ;;  %v2028_v51 = vadd.f32 %v2027_v43, %v4496_v56  ;;  %v2068_v53 = vadd.f32 %v2067_v44, %v4496_v56  ;;  %v2193_v36 = vpop.permute.xlu1 %2192 }
 0x431   : > { %v2223_v57 = vsub.f32 %v2111_v37, %v2207_v41  ;;  %v2231_v60 = vsub.f32 %v2119_v38, %v2215_v42  ;;  %v2029_v61 = vpop.f32.mrf.mxu0  ;;  %v2069_v62 = vpop.f32.mrf.mxu1 }
 0x432   : > { %v3245_v1 = vpack.c.bf16 %v2254_v47, %v2253_v39  ;;  %v3265_v2 = vpack.c.bf16 %v2262_v48, %v2261_v40  ;;  %v2208_v3 = vmul.f32 %v4487_v49, %v2028_v51  ;;  %v2216_v5 = vmul.f32 %v2183_v45, %v2068_v53  ;;  %v2114_v39 = vld [vmem:[#allocation5 + $0x68] sm:$0xff]  ;;  %v2122_v40 = vld [vmem:[#allocation5 + $0x70] sm:$0xff]  ;;  %v2198_v48 = vpop.permute.xlu0 %2197 }
 0x433   : > { %v2239_v6 = vadd.f32 %v2223_v57, %v2026_v54  ;;  %v2247_v7 = vadd.f32 %v2231_v60, %v2066_v59  ;;  %v2030_v8 = vadd.f32 %v2029_v61, %v4502_v0  ;;  %v2070_v9 = vadd.f32 %v2069_v62, %v4502_v0  ;;  %v2033_v10 = vpop.f32.mrf.mxu0  ;;  %v2073_v12 = vpop.f32.mrf.mxu1  ;;  %v2123_v62 = vld [vmem:[#allocation5 + $0x78] sm:$0xff] }
 0x434   : > { %3246 = vst [vmem:[%s4443_s22] sm:$0xff] %v3245_v1   ;;  %3286 = vst [vmem:[%s4125_s28] sm:$0xff] %v3245_v1   ;;  %v2224_v20 = vsub.f32 %v2112_v46, %v2208_v3  ;;  %v2232_v14 = vsub.f32 %v2120_v63, %v2216_v5  ;;  %v2034_v11 = vadd.f32 %v2033_v10, %v4496_v56 }
 0x435   : > { %3348 = vst [vmem:[%s4443_s22 + $0x20] sm:$0xff] %v3265_v2   ;;  %3355 = vst [vmem:[%s4125_s28 + $0x20] sm:$0xff] %v3265_v2   ;;  %v2074_v49 = vadd.f32 %v2073_v12, %v4496_v56  ;;  %v2035_v21 = vpop.f32.mrf.mxu0  ;;  %v2075_v22 = vpop.f32.mrf.mxu1  ;;  %v2255_v24 = vmax.f32 %v2239_v6, 0.0  ;;  %v2263_v19 = vmax.f32 %v2247_v7, 0.0 }
 0x436   : > { %v2240_v23 = vadd.f32 %v2224_v20, %v2030_v8  ;;  %v2248_v4 = vadd.f32 %v2232_v14, %v2070_v9  ;;  %v2209_v15 = vmul.f32 %v4489_v50, %v2034_v11  ;;  %v2036_v31 = vadd.f32 %v2035_v21, %v4502_v0  ;;  %v2203_v9 = vpop.permute.xlu1 %2202 }
 0x437   : > { %v2217_v17 = vmul.f32 %v2188_v13, %v2074_v49  ;;  %v2037_v25 = vpop.f32.mrf.mxu0  ;;  %v2077_v26 = vpop.f32.mrf.mxu1  ;;  %v2076_v32 = vadd.f32 %v2075_v22, %v4502_v0 }
 0x438   : > { %v2256_v27 = vmax.f32 %v2240_v23, 0.0  ;;  %v2264_v28 = vmax.f32 %v2248_v4, 0.0  ;;  %v2225_v29 = vsub.f32 %v2113_v16, %v2209_v15  ;;  %v2038_v33 = vadd.f32 %v2037_v25, %v4496_v56  ;;  %v2116_v16 = vld [vmem:[#allocation5 + $0x48] sm:$0xff] }
 0x439   : > { %v2233_v30 = vsub.f32 %v2121_v18, %v2217_v17  ;;  %v2078_v34 = vadd.f32 %v2077_v26, %v4496_v56  ;;  %v2039_v50 = vpop.f32.mrf.mxu0  ;;  %v2079_v35 = vpop.f32.mrf.mxu1  ;;  %v2124_v18 = vld [vmem:[#allocation5 + $0x28] sm:$0xff] }
 0x43a   : > { %v3250_v37 = vpack.c.bf16 %v2256_v27, %v2255_v24  ;;  %v3270_v38 = vpack.c.bf16 %v2264_v28, %v2263_v19  ;;  %v2241_v41 = vadd.f32 %v2225_v29, %v2036_v31  ;;  %v2210_v43 = vmul.f32 %v4491_v52, %v2038_v33  ;;  %v2115_v52 = vld [vmem:[#allocation5 + $0x8] sm:$0xff] }
 0x43b   : > { %v2249_v42 = vadd.f32 %v2233_v30, %v2076_v32  ;;  %v2218_v44 = vmul.f32 %v2193_v36, %v2078_v34  ;;  %v2043_v45 = vpop.f32.mrf.mxu0  ;;  %v2083_v47 = vpop.f32.mrf.mxu1  ;;  %v2040_v54 = vadd.f32 %v2039_v50, %v4502_v0  ;;  %v2080_v59 = vadd.f32 %v2079_v35, %v4502_v0 }
 0x43c   : > { %3345 = vst [vmem:[%s4443_s22 + $0x8] sm:$0xff] %v3250_v37   ;;  %3352 = vst [vmem:[%s4125_s28 + $0x8] sm:$0xff] %v3250_v37   ;;  %v2044_v51 = vadd.f32 %v2043_v45, %v4496_v56  ;;  %v2084_v53 = vadd.f32 %v2083_v47, %v4496_v56  ;;  %v2226_v57 = vsub.f32 %v2114_v39, %v2210_v43  ;;  %v2257_v2 = vmax.f32 %v2241_v41, 0.0 }
 0x43d   : > { %3349 = vst [vmem:[%s4443_s22 + $0x28] sm:$0xff] %v3270_v38   ;;  %3356 = vst [vmem:[%s4125_s28 + $0x28] sm:$0xff] %v3270_v38   ;;  %v2234_v60 = vsub.f32 %v2122_v40, %v2218_v44  ;;  %v2045_v61 = vpop.f32.mrf.mxu0  ;;  %v2085_v46 = vpop.f32.mrf.mxu1  ;;  %v2265_v3 = vmax.f32 %v2249_v42, 0.0 }
 0x43e   : > { %v2211_v63 = vmul.f32 %v4494_v55, %v2044_v51  ;;  %v2219_v1 = vmul.f32 %v2198_v48, %v2084_v53  ;;  %v2242_v5 = vadd.f32 %v2226_v57, %v2040_v54  ;;  %v2046_v49 = vadd.f32 %v2045_v61, %v4502_v0 }
 0x43f   : > { %v2250_v6 = vadd.f32 %v2234_v60, %v2080_v59  ;;  %v2047_v7 = vpop.f32.mrf.mxu0  ;;  %v2087_v8 = vpop.f32.mrf.mxu1  ;;  %v2086_v55 = vadd.f32 %v2085_v46, %v4502_v0 }
 0x440   : > { %v2227_v10 = vsub.f32 %v2115_v52, %v2211_v63  ;;  %v2235_v12 = vsub.f32 %v2123_v62, %v2219_v1  ;;  %v2048_v13 = vadd.f32 %v2047_v7, %v4496_v56  ;;  %v2088_v20 = vadd.f32 %v2087_v8, %v4496_v56 }
 0x441   : > { %v2258_v14 = vmax.f32 %v2242_v5, 0.0  ;;  %v2266_v11 = vmax.f32 %v2250_v6, 0.0  ;;  %v2049_v21 = vpop.f32.mrf.mxu0  ;;  %v2089_v22 = vpop.f32.mrf.mxu1 }
 0x442   : > { %v2212_v23 = vmul.f32 %v4498_v58, %v2048_v13  ;;  %v2220_v4 = vmul.f32 %v2203_v9, %v2088_v20  ;;  %v2243_v56 = vadd.f32 %v2227_v10, %v2046_v49  ;;  %v2251_v24 = vadd.f32 %v2235_v12, %v2086_v55 }
 0x443   : > { %v3255_v15 = vpack.c.bf16 %v2258_v14, %v2257_v2  ;;  %v3275_v17 = vpack.c.bf16 %v2266_v11, %v2265_v3  ;;  %v2050_v19 = vadd.f32 %v2049_v21, %v4502_v0  ;;  %v2090_v26 = vadd.f32 %v2089_v22, %v4502_v0 }
 0x444   : > { %v2228_v25 = vsub.f32 %v2116_v16, %v2212_v23  ;;  %v2236_v27 = vsub.f32 %v2124_v18, %v2220_v4  ;;  %v2259_v29 = vmax.f32 %v2243_v56, 0.0  ;;  %v2267_v30 = vmax.f32 %v2251_v24, 0.0 }
 0x445   : > { %3346 = vst [vmem:[%s4443_s22 + $0x10] sm:$0xff] %v3255_v15   ;;  %3353 = vst [vmem:[%s4125_s28 + $0x10] sm:$0xff] %v3255_v15  }
 0x446   : > { %3350 = vst [vmem:[%s4443_s22 + $0x30] sm:$0xff] %v3275_v17   ;;  %3357 = vst [vmem:[%s4125_s28 + $0x30] sm:$0xff] %v3275_v17   ;;  %v2244_v58 = vadd.f32 %v2228_v25, %v2050_v19  ;;  %v2252_v28 = vadd.f32 %v2236_v27, %v2090_v26 }
 0x448   : > { %v2260_v31 = vmax.f32 %v2244_v58, 0.0  ;;  %v2268_v32 = vmax.f32 %v2252_v28, 0.0 }
 0x44a   : > { %v3260_v33 = vpack.c.bf16 %v2260_v31, %v2259_v29  ;;  %v3280_v34 = vpack.c.bf16 %v2268_v32, %v2267_v30 }
 0x44c   : > { %3347 = vst [vmem:[%s4443_s22 + $0x18] sm:$0xff] %v3260_v33   ;;  %3354 = vst [vmem:[%s4125_s28 + $0x18] sm:$0xff] %v3260_v33  }
 0x44d   : > { %3351 = vst [vmem:[%s4443_s22 + $0x38] sm:$0xff] %v3280_v34   ;;  %3358 = vst [vmem:[%s4125_s28 + $0x38] sm:$0xff] %v3280_v34  }
 0x44e PF: > { %p2365_p11 = scmp.eq.s32.totalorder %s3923_s13, 1 }
 0x450   : > { %p4558_p12 = pnand %p2365_p11, %p1799_p9 }
 0x451   : > { %s2372_s20 = sshra.s32 (!%p4558_p12), %s4106_s23, 3 }
 0x452   : > { %p2367_p13 = pneg %p4558_p12  ;;  %2369 = sbr.rel (%p4558_p12) target bundleno = 1343 (0x53f), region = 113 }
 0x453   : > { %s3027_s28 = sshll.u32 (!%p4558_p12), %s2372_s20, 2 }
 0x454   : > { %s2375_s30 = scalar_lea.vmem (!%p4558_p12), [#allocation2], %s3027_s28 }
 0x457   : > { %v3944_v0 = vmov 0.0   ;;  %vm3945_vm2 = vmmov 0   ;;  %v3817_v50 = vld [vmem:[%s2375_s30 + $0x38] sm:$0xff]   ;;  %v3818_v35 = vld [vmem:[%s2375_s30 + $0x30] sm:$0xff]   ;;  %v3819_v36 = vld [vmem:[%s2375_s30 + $0x28] sm:$0xff]  }
 0x458   : > { %3530 = vmatprep.subr.bf16.mxu0 %v3944_v0  ;;  %3546 = vmatprep.mubr.msk.bf16.mxu0 %vm3945_vm2, %v3944_v0  ;;  %v3820_v37 = vld [vmem:[%s2375_s30 + $0x20] sm:$0xff]   ;;  %v3821_v38 = vld [vmem:[%s2375_s30 + $0x18] sm:$0xff]   ;;  %v3822_v39 = vld [vmem:[%s2375_s30 + $0x10] sm:$0xff]  }
 0x459   : > { %3531 = vmatpush3.bf16.msra.mxu0 %v3817_v50  ;;  %v3823_v40 = vld [vmem:[%s2375_s30 + $0x8] sm:$0xff]   ;;  %v3824_v41 = vld [vmem:[%s2375_s30] sm:$0xff]  }
 0x45a   : > { %3532 = vmatprep.subr.bf16.mxu0 %v3944_v0  ;;  %v2371_v42 = vld [vmem:[%s4103_s29] sm:$0xf] }
 0x45b   : > { %v2370_v43 = vld [vmem:[#allocation6] sm:$0xff] }
 0x45d   : > { %3533 = vmatpush3.bf16.msra.mxu0 %v3818_v35 }
 0x45e   : > { %3534 = vmatprep.subr.bf16.mxu0 %v3944_v0 }
 0x461   : > { %3535 = vmatpush3.bf16.msra.mxu0 %v3819_v36 }
 0x462   : > { %3536 = vmatprep.subr.bf16.mxu0 %v3944_v0 }
 0x465   : > { %3537 = vmatpush3.bf16.msra.mxu0 %v3820_v37 }
 0x466   : > { %3538 = vmatprep.subr.bf16.mxu0 %v3944_v0 }
 0x469   : > { %3539 = vmatpush3.bf16.msra.mxu0 %v3821_v38 }
 0x46a   : > { %3540 = vmatprep.subr.bf16.mxu0 %v3944_v0 }
 0x46d   : > { %3541 = vmatpush3.bf16.msra.mxu0 %v3822_v39 }
 0x46e   : > { %3542 = vmatprep.subr.bf16.mxu0 %v3944_v0 }
 0x471   : > { %3543 = vmatpush3.bf16.msra.mxu0 %v3823_v40 }
 0x472   : > { %3544 = vmatprep.subr.bf16.mxu0 %v3944_v0 }
 0x475   : > { %3545 = vmatpush3.bf16.msra.mxu0 %v3824_v41 }
 0x478   : > { %3547 = vmatmul.mubr.bf16.vlgmr.msra.gmra.mxu0 %v2371_v42 }
 0x538   : > { %v2474_v44 = vpop.f32.mrf.mxu0 }
 0x539   : > { %v2480_v45 = vadd.f32 %v2474_v44, %v2370_v43 }
 0x53a   : > { %v3548_v47 = vpop.f32.mrf.mxu0 }
 0x53b   : > { %2481 = vst [vmem:[#allocation6] sm:$0xff] %v2480_v45 }
 0x53c   : > { %v2477_v48 = vpop.f32.mrf.mxu0 }
 0x53e   : > { %v3549_v51 = vpop.f32.mrf.mxu0 }
 0x53f PF: > { %p2482_p0 = scmp.eq.s32.totalorder %s3919_s12, 2 }
 0x541   : > { %p2483_p1 = pnand %p2482_p0, %p2367_p13 }
 0x543   : > { %2486 = sbr.rel (%p2483_p1) target bundleno = 1783 (0x6f7), region = 117 }
 0x548   : > { %v3825_v53 = vld [vmem:[%s4678_s5 + $0x38] sm:$0xff]   ;;  %v3946_v54 = vmov 0.0   ;;  %v3826_v57 = vld [vmem:[%s4678_s5 + $0x30] sm:$0xff]   ;;  %vm3947_vm3 = vmmov 0   ;;  %v3827_v59 = vld [vmem:[%s4678_s5 + $0x28] sm:$0xff]  }
 0x549   : > { %3550 = vmatprep.subr.bf16.mxu0 %v3946_v54  ;;  %3570 = vmatprep.subr.bf16.mxu1 %v3946_v54  ;;  %v2487_v60 = vld [vmem:[#allocation6] sm:$0xff]  ;;  %v3833_v61 = vld [vmem:[%s4678_s5 + $0x78] sm:$0xff]   ;;  %v3834_v46 = vld [vmem:[%s4678_s5 + $0x70] sm:$0xff]  }
 0x54a   : > { %3551 = vmatpush3.bf16.msra.mxu0 %v3825_v53  ;;  %3566 = vmatprep.mubr.msk.bf16.mxu0 %vm3947_vm3, %v3946_v54  ;;  %2488 = vst [vmem:[#allocation8] sm:$0xff] %v2487_v60  ;;  %v3828_v52 = vld [vmem:[%s4678_s5 + $0x20] sm:$0xff]   ;;  %v3829_v62 = vld [vmem:[%s4678_s5 + $0x18] sm:$0xff]   ;;  %v3835_v63 = vld [vmem:[%s4678_s5 + $0x68] sm:$0xff]   ;;  %v2489_v8 = vpack.c.bf16 %v2487_v60, %v2487_v60 }
 0x54b   : > { %3552 = vmatprep.subr.bf16.mxu0 %v3946_v54  ;;  %3586 = vmatprep.mubr.msk.bf16.mxu1 %vm3947_vm3, %v3946_v54  ;;  %v3830_v1 = vld [vmem:[%s4678_s5 + $0x10] sm:$0xff]   ;;  %v3836_v2 = vld [vmem:[%s4678_s5 + $0x60] sm:$0xff]   ;;  %v3831_v3 = vld [vmem:[%s4678_s5 + $0x8] sm:$0xff]  }
 0x54c   : > { %3571 = vmatpush3.bf16.msra.mxu1 %v3833_v61  ;;  %v3837_v5 = vld [vmem:[%s4678_s5 + $0x58] sm:$0xff]   ;;  %v3832_v6 = vld [vmem:[%s4678_s5] sm:$0xff]   ;;  %v3838_v7 = vld [vmem:[%s4678_s5 + $0x50] sm:$0xff]  }
 0x54d   : > { %3572 = vmatprep.subr.bf16.mxu1 %v3946_v54  ;;  %v3839_v9 = vld [vmem:[%s4678_s5 + $0x48] sm:$0xff]   ;;  %v3840_v10 = vld [vmem:[%s4678_s5 + $0x40] sm:$0xff]  }
 0x54e   : > { %3553 = vmatpush3.bf16.msra.mxu0 %v3826_v57  ;;  %v3036_v12 = vld [vmem:[%s4679_s6] ss:$0 sm:$0xff]  ;;  %v3045_v16 = vld [vmem:[%s4679_s6 + $0x1] ss:$0 sm:$0xff] }
 0x54f   : > { %3554 = vmatprep.subr.bf16.mxu0 %v3946_v54 }
 0x550   : > { %3573 = vmatpush3.bf16.msra.mxu1 %v3834_v46 }
 0x551   : > { %3574 = vmatprep.subr.bf16.mxu1 %v3946_v54 }
 0x552   : > { %3555 = vmatpush3.bf16.msra.mxu0 %v3827_v59 }
 0x553   : > { %3556 = vmatprep.subr.bf16.mxu0 %v3946_v54 }
 0x554   : > { %3575 = vmatpush3.bf16.msra.mxu1 %v3835_v63 }
 0x555   : > { %3576 = vmatprep.subr.bf16.mxu1 %v3946_v54 }
 0x556   : > { %3557 = vmatpush3.bf16.msra.mxu0 %v3828_v52 }
 0x557   : > { %3558 = vmatprep.subr.bf16.mxu0 %v3946_v54 }
 0x558   : > { %3577 = vmatpush3.bf16.msra.mxu1 %v3836_v2 }
 0x559   : > { %3578 = vmatprep.subr.bf16.mxu1 %v3946_v54 }
 0x55a   : > { %3559 = vmatpush3.bf16.msra.mxu0 %v3829_v62 }
 0x55b   : > { %3560 = vmatprep.subr.bf16.mxu0 %v3946_v54 }
 0x55c   : > { %3579 = vmatpush3.bf16.msra.mxu1 %v3837_v5 }
 0x55d   : > { %3580 = vmatprep.subr.bf16.mxu1 %v3946_v54 }
 0x55e   : > { %3561 = vmatpush3.bf16.msra.mxu0 %v3830_v1 }
 0x55f   : > { %3562 = vmatprep.subr.bf16.mxu0 %v3946_v54 }
 0x560   : > { %3581 = vmatpush3.bf16.msra.mxu1 %v3838_v7 }
 0x561   : > { %3582 = vmatprep.subr.bf16.mxu1 %v3946_v54 }
 0x562   : > { %3563 = vmatpush3.bf16.msra.mxu0 %v3831_v3 }
 0x563   : > { %3564 = vmatprep.subr.bf16.mxu0 %v3946_v54 }
 0x564   : > { %3583 = vmatpush3.bf16.msra.mxu1 %v3839_v9 }
 0x565   : > { %3584 = vmatprep.subr.bf16.mxu1 %v3946_v54 }
 0x566   : > { %3565 = vmatpush3.bf16.msra.mxu0 %v3832_v6 }
 0x568   : > { %3585 = vmatpush3.bf16.msra.mxu1 %v3840_v10 }
 0x569   : > { %3567 = vmatmul.mubr.bf16.vlgmr.msra.gmra.mxu0 %v2489_v8 }
 0x629   : > { %v2593_v13 = vpop.f32.mrf.mxu0 }
 0x62a   : > { %v2594_v20 = vadd.f32 %v3036_v12, %v2593_v13 }
 0x62b   : > { %v3568_v14 = vpop.f32.mrf.mxu0 }
 0x62c   : > { %v2599_v11 = vmax.f32 %v2594_v20, 0.0 }
 0x62d   : > { %v2596_v49 = vpop.f32.mrf.mxu0 }
 0x62e   : > { %v2600_v55 = vpack.c.bf16 %v2599_v11, %v2599_v11 }
 0x62f   : > { %v3569_v21 = vpop.f32.mrf.mxu0 }
 0x630   : > { %3587 = vmatmul.mubr.bf16.vlgmr.msra.gmra.mxu1 %v2600_v55 }
 0x6f0   : > { %v2704_v22 = vpop.f32.mrf.mxu1 }
 0x6f1   : > { %v2705_v18 = vadd.f32 %v3045_v16, %v2704_v22 }
 0x6f2   : > { %v3588_v23 = vpop.f32.mrf.mxu1 }
 0x6f3   : > { %2710 = vst [vmem:[%s4682_s9] sm:$0xff] %v2705_v18 }
 0x6f4   : > { %v2707_v4 = vpop.f32.mrf.mxu1 }
 0x6f6   : > { %v3589_v15 = vpop.f32.mrf.mxu1 }
 0x6f7 PF: > { %s4698_s28 = sadd.s32 4294967295, %s3939_s17   ;;  %s3948_s11 = smov [#allocation8]  }
 0x6f8   : > { %p4631_p2 = scmp.eq.s32.totalorder %s4698_s28, 17  ;;  %s2727_s13 = sshll.u32 %s3948_s11, 4  ;;  %s2728_s13 = int_to_ptr.vmem [resolvable:$true] %s2727_s13 }
 0x6f9   : > { %s3841_s29 = scalar_lea.vmem %s2728_s13, 128  ;;  %p3848_p6 = scmp.lt.s32.totalorder %s2728_s13, %s2728_s13 }
 0x6fa   : > { %p3842_p3 = scmp.ne.s32.totalorder %s2728_s13, %s3841_s29  ;;  %p3849_p7 = scmp.lt.s32.totalorder %s3841_s29, %s3841_s29 }
 0x6fc   : > { %p3843_p4 = pnand %p3842_p3, %p4631_p2  ;;  %p3850_p8 = por %p3849_p7, %p3848_p6 }
 0x6fe   : > { %p3844_p5 = pneg %p3843_p4 }
 0x700   : > { %p3851_p9 = pnand %p3850_p8, %p3844_p5 }
 0x702   : > { %3854 = shalt.err (!%p3851_p9)
}
 0x703   : > { %3642 = dma.vmem_to_hbm [thread:$0]  (%p4631_p2), %s2728_s13, 128, %s4681_s8, [#allocation9]  }
 0x704   : > { %3902 = dma.done.wait (%p4631_p2), [#allocation9], 128  }
 0x705   : > { %3904 = vsyncadd (%p4631_p2), [#allocation9], 4294967168 }
 0x706 PF: > { %s21_s17 = sadd.s32 1, %s3939_s17   ;;  %s4700_s16 = sld [smem:[#allocation17_spill]] }
 0x707   : > { %p18_p10 = scmp.ge.s32.totalorder %s21_s17, 20   ;;  %s4701_s11 = sld [smem:[#allocation11_spill]] }
 0x708   : > { %s4702_s12 = sld [smem:[#allocation12_spill]]  ;;  %s4707_s30 = smov %s3911_s10 }
 0x709   : > { %s4703_s13 = sld [smem:[#allocation13_spill]] }
 0x70a   : > { %s4704_s14 = sld [smem:[#allocation14_spill]] }
 0x70b   : > { %s4705_s15 = sld [smem:[#allocation15_spill]] }
 0x70c   : > { %s4706_s25 = sld [smem:[#allocation16_spill]]  ;;  %s4708_s10 = smov %s4700_s16 }
 0x70e   :  { %20 = sbr.rel (!%p18_p10) target bundleno = 7 (0x7), region = 183 }
 0x712   : > { %s4709_s16 = smov %s4706_s25 }
 0x713   :  { %2754 = vsyncpa [#allocation9], 1 }
 0x714   :  { %2756 = vsyncpa [#allocation9 + $0x1], 1 }

</bundles_post_ra>
